<compile_context>
chip_gen: v6e
topology: v6e:2x2x1
jax: 0.10.0
libtpu: 0.0.40
codegen_flags: <defaults>
</compile_context>

<pallas_src>
from typing import NamedTuple, Tuple

import jax
import jax.numpy as jnp
from jax.experimental import pallas as pl
from jax.experimental.pallas import tpu as pltpu

# Use full-f32 MXU passes for every dot (kernel and pure-JAX reference alike)
# so the end-of-script correctness check is tight and deterministic.
jax.config.update("jax_default_matmul_precision", "highest")

SUBLANE = 8


def _round_up(n: int, m: int) -> int:
    return ((n + m - 1) // m) * m


def _cdiv(a: int, b: int) -> int:
    return -(-a // b)


class PackedParams(NamedTuple):
    slab: jax.Array              # [rows, width] f32 — all parameters, one DMA
    offs: Tuple[int, ...]        # 8-aligned row offset of each segment
    input_dim: int
    hidden: int
    n_actions: int
    T: int
    width: int                   # slab lane width = max(hidden, n_actions)


def pack_params(params) -> PackedParams:
    """Fold the time embedding into the additive biases and concatenate every
    parameter into one [rows, width] f32 slab (single DMA, true lane widths).

    Folding (matches the reversed-range reference):
      * the encoder bias absorbs emb[T-1] (the first denoise step's embedding);
      * the post-w2 bias of kernel step s (s = 0..T-2) absorbs emb[T-2-s],
        i.e. the embedding consumed by the *next* denoise step;
      * the last step adds plain b2.
    """
    (w_enc, b_enc, emb, w1, b1, w2, b2, w_dec, b_dec) = params
    input_dim, hidden = w_enc.shape
    n_actions = w_dec.shape[1]
    T = emb.shape[0]
    width = max(hidden, n_actions)   # no 128 padding: full-dim blocks are legal

    def pad2(a, rows):
        r, c = a.shape
        return jnp.pad(a.astype(jnp.float32), ((0, rows - r), (0, width - c)))

    enc_bias = b_enc + emb[T - 1:T, :]
    post_bias = jnp.concatenate(
        [b2 + emb[T - 2 - s:T - 1 - s, :] for s in range(T - 1)] + [b2], axis=0)

    segs = [
        pad2(w_enc, _round_up(input_dim, SUBLANE)),
        pad2(enc_bias, SUBLANE),
        pad2(w1, _round_up(hidden, SUBLANE)),
        pad2(b1, SUBLANE),
        pad2(w2, _round_up(hidden, SUBLANE)),
        pad2(post_bias, _round_up(T, SUBLANE)),
        pad2(w_dec, _round_up(hidden, SUBLANE)),
        pad2(b_dec, SUBLANE),
    ]
    offs, o = [], 0
    for seg in segs:
        offs.append(o)
        o += seg.shape[0]
    slab = jnp.concatenate(segs, axis=0)
    return PackedParams(slab=slab, offs=tuple(offs), input_dim=int(input_dim),
                        hidden=int(hidden), n_actions=int(n_actions),
                        T=int(T), width=int(width))


def _make_kernel(packed: PackedParams):
    (o_wenc, o_benc, o_w1, o_b1, o_w2, o_pb, o_wdec, o_bdec) = packed.offs
    din, hid_dim, T, n_act = (packed.input_dim, packed.hidden,
                              packed.T, packed.n_actions)

    def kernel(x_ref, p_ref, out_ref):
        # static, 8-row-aligned slices into the packed parameter slab
        w_enc = p_ref[o_wenc:o_wenc + din, :]
        enc_b = p_ref[o_benc:o_benc + 1, :]          # emb[T-1] pre-folded in
        w1 = p_ref[o_w1:o_w1 + hid_dim, :]
        b1 = p_ref[o_b1:o_b1 + 1, :]                 # [1, W]: implicit sublane broadcast
        w2 = p_ref[o_w2:o_w2 + hid_dim, :]

        # state encoder: [bb, din] @ [din, W]
        h = jnp.dot(x_ref[...], w_enc, preferred_element_type=jnp.float32) + enc_b

        # reverse-diffusion denoise loop, statically unrolled (T small & static)
        for s in range(T):
            out = jnp.maximum(h, 0.0)                                   # ReLU
            out = jnp.dot(out, w1, preferred_element_type=jnp.float32) + b1
            out = jnp.maximum(out, 0.0)                                 # ReLU
            out = jnp.dot(out, w2, preferred_element_type=jnp.float32)
            # b2 (+ the next step's time embedding) pre-folded by pack_params
            h = out + p_ref[o_pb + s:o_pb + s + 1, :]

        # decoder — weight/bias reads deferred here to keep live ranges short
        w_dec = p_ref[o_wdec:o_wdec + hid_dim, :]
        b_dec = p_ref[o_bdec:o_bdec + 1, :]
        dec = jnp.dot(h, w_dec, preferred_element_type=jnp.float32) + b_dec
        out_ref[...] = dec[:, :n_act]

    return kernel


def _forward_packed(inputs, packed: PackedParams, *, batch_block: int = 512):
    """inputs: [B, input_dim] float32. Returns logits [B, n_actions]."""
    B, input_dim = inputs.shape
    assert input_dim == packed.input_dim, "input feature dim mismatch"

    # Batch tiling: >= 2 grid points whenever B >= 16 (keeps both v7x TCs busy
    # under dimension_semantics=("parallel",)), tile chosen to minimise padding.
    b8 = _round_up(B, SUBLANE)
    n_blocks = max(2 if b8 >= 2 * SUBLANE else 1, _cdiv(b8, batch_block))
    bb = _round_up(_cdiv(b8, n_blocks), SUBLANE)
    n_blocks = _cdiv(b8, bb)
    bp = bb * n_blocks

    x = jnp.pad(inputs.astype(jnp.float32), ((0, bp - B), (0, 0)))

    hid, T, n_act = packed.hidden, packed.T, packed.n_actions
    flops = 2 * B * (input_dim * hid + 2 * T * hid * hid + hid * n_act)  # true dims
    bytes_accessed = 4 * (B * input_dim + packed.slab.size + B * n_act)

    out = pl.pallas_call(
        _make_kernel(packed),
        out_shape=jax.ShapeDtypeStruct((bp, n_act), jnp.float32),
        grid=(n_blocks,),
        in_specs=[
            pl.BlockSpec((bb, input_dim), lambda i: (i, 0)),    # activations, batch-tiled
            pl.BlockSpec(packed.slab.shape, lambda i: (0, 0)),  # resident param slab
        ],
        out_specs=pl.BlockSpec((bb, n_act), lambda i: (i, 0)),
        compiler_params=pltpu.CompilerParams(
            dimension_semantics=("parallel",)),                 # megacore split on v7x
        cost_estimate=pl.CostEstimate(
            flops=flops, transcendentals=0, bytes_accessed=bytes_accessed),
    )(x, packed.slab)
    return out[:B]


def make_diffusion_actor(params, *, batch_block: int = 512):
    """Pack the parameters ONCE and return a jitted forward(inputs) -> logits.
    The per-call path is just: pad batch -> one pallas_call -> slice."""
    packed = pack_params(params)

    @jax.jit
    def forward(inputs):
        return _forward_packed(inputs, packed, batch_block=batch_block)

    return forward


def diffusion_actor_forward(inputs, params, *, batch_block: int = 512):
    """One-shot convenience wrapper (re-packs params every call); prefer
    make_diffusion_actor() for repeated use."""
    return _forward_packed(inputs, pack_params(params), batch_block=batch_block)


def make_params(key, input_dim, hidden, n_actions, T):
    """Deterministic synthetic parameters (PyTorch nn.Linear weights are
    [out, in]; here they are stored pre-transposed as [in, out])."""
    ks = jax.random.split(key, 9)
    scale = 0.1
    w_enc = scale * jax.random.normal(ks[0], (input_dim, hidden), jnp.float32)
    b_enc = scale * jax.random.normal(ks[1], (1, hidden), jnp.float32)
    emb = scale * jax.random.normal(ks[2], (T, hidden), jnp.float32)   # nn.Embedding(T, hidden)
    w1 = scale * jax.random.normal(ks[3], (hidden, hidden), jnp.float32)
    b1 = scale * jax.random.normal(ks[4], (1, hidden), jnp.float32)
    w2 = scale * jax.random.normal(ks[5], (hidden, hidden), jnp.float32)
    b2 = scale * jax.random.normal(ks[6], (1, hidden), jnp.float32)
    w_dec = scale * jax.random.normal(ks[7], (hidden, n_actions), jnp.float32)
    b_dec = scale * jax.random.normal(ks[8], (1, n_actions), jnp.float32)
    return (w_enc, b_enc, emb, w1, b1, w2, b2, w_dec, b_dec)


def reference_forward(inputs, params):
    """Pure-JAX reference mirroring the PyTorch module semantics."""
    (w_enc, b_enc, emb, w1, b1, w2, b2, w_dec, b_dec) = params
    h = inputs @ w_enc + b_enc
    T = emb.shape[0]
    for t in reversed(range(T)):
        out = h + emb[t]
        out = jnp.maximum(out, 0.0)
        out = out @ w1 + b1
        out = jnp.maximum(out, 0.0)
        out = out @ w2 + b2
        h = out
    return h @ w_dec + b_dec


if __name__ == "__main__":
    # args: obs_shape=28, n_agents=4 -> input_dim=32; hidden_dim=32;
    #       n_actions=8; diffusion_steps T=4; batch=8
    B = 8
    obs_shape, n_agents = 28, 4
    input_dim = obs_shape + n_agents
    hidden = 32
    n_actions = 8
    T = 4

    key = jax.random.PRNGKey(0)
    k_in, k_par = jax.random.split(key)
    inputs = jax.random.normal(k_in, (B, input_dim), jnp.float32)
    params = make_params(k_par, input_dim, hidden, n_actions, T)

    actor = make_diffusion_actor(params)            # parameters packed once here
    logits = jax.block_until_ready(actor(inputs))   # compile + run
    logits = jax.block_until_ready(actor(inputs))   # steady-state call (cached exe)

    ref = reference_forward(inputs, params)
    assert logits.shape == (B, n_actions)
    assert jnp.allclose(logits, ref, rtol=1e-4, atol=1e-4), "mismatch vs reference"

    print("KERNEL_OK")
</pallas_src>

<mosaic_0001>
module attributes {stable_mosaic.version = 11 : i64} {
  func.func @kernel(%arg0: i32, %arg1: memref<8x32xf32, #tpu.memory_space<vmem>>, %arg2: memref<160x32xf32, #tpu.memory_space<vmem>>, %arg3: memref<8x8xf32, #tpu.memory_space<vmem>>) attributes {dimension_semantics = [#tpu.dimension_semantics<parallel>], iteration_bounds = array<i64: 1>, scalar_prefetch = 0 : i64, scratch_operands = 0 : i64, tpu.core_type = #tpu.core_type<tc>, window_params = [{transform_indices = @transform_0, window_bounds = array<i64: 8, 32>}, {pipeline_mode = #tpu.pipeline_mode<synchronous>, transform_indices = @transform_1, window_bounds = array<i64: 160, 32>}, {transform_indices = @transform_2, window_bounds = array<i64: 8, 8>}]} {
    %c0 = arith.constant 0 : index
    %c0_0 = arith.constant 0 : index
    %0 = vector.load %arg2[%c0, %c0_0] : memref<160x32xf32, #tpu.memory_space<vmem>>, vector<32x32xf32>
    %c32 = arith.constant 32 : index
    %c0_1 = arith.constant 0 : index
    %1 = vector.load %arg2[%c32, %c0_1] : memref<160x32xf32, #tpu.memory_space<vmem>>, vector<1x32xf32>
    %c40 = arith.constant 40 : index
    %c0_2 = arith.constant 0 : index
    %2 = vector.load %arg2[%c40, %c0_2] : memref<160x32xf32, #tpu.memory_space<vmem>>, vector<32x32xf32>
    %c72 = arith.constant 72 : index
    %c0_3 = arith.constant 0 : index
    %3 = vector.load %arg2[%c72, %c0_3] : memref<160x32xf32, #tpu.memory_space<vmem>>, vector<1x32xf32>
    %c80 = arith.constant 80 : index
    %c0_4 = arith.constant 0 : index
    %4 = vector.load %arg2[%c80, %c0_4] : memref<160x32xf32, #tpu.memory_space<vmem>>, vector<32x32xf32>
    %c0_5 = arith.constant 0 : index
    %c0_6 = arith.constant 0 : index
    %5 = vector.load %arg1[%c0_5, %c0_6] : memref<8x32xf32, #tpu.memory_space<vmem>>, vector<8x32xf32>
    %cst = arith.constant dense<0.000000e+00> : vector<8x32xf32>
    %6 = tpu.matmul %5, %0, %cst {dimension_numbers = #tpu.dot_dimension_numbers<[1], [0], [0], [1], [0, 0, 1, 1], [], []>, precision = #tpu.contract_precision<fp32>} : vector<8x32xf32>, vector<32x32xf32>, vector<8x32xf32> -> vector<8x32xf32>
    %7 = vector.broadcast %1 : vector<1x32xf32> to vector<8x32xf32>
    %8 = arith.addf %6, %7 : vector<8x32xf32>
    %cst_7 = arith.constant 0.000000e+00 : f32
    %9 = vector.broadcast %cst_7 : f32 to vector<8x32xf32>
    %10 = arith.maximumf %8, %9 : vector<8x32xf32>
    %cst_8 = arith.constant dense<0.000000e+00> : vector<8x32xf32>
    %11 = tpu.matmul %10, %2, %cst_8 {dimension_numbers = #tpu.dot_dimension_numbers<[1], [0], [0], [1], [0, 0, 1, 1], [], []>, precision = #tpu.contract_precision<fp32>} : vector<8x32xf32>, vector<32x32xf32>, vector<8x32xf32> -> vector<8x32xf32>
    %12 = vector.broadcast %3 : vector<1x32xf32> to vector<8x32xf32>
    %13 = arith.addf %11, %12 : vector<8x32xf32>
    %cst_9 = arith.constant 0.000000e+00 : f32
    %14 = vector.broadcast %cst_9 : f32 to vector<8x32xf32>
    %15 = arith.maximumf %13, %14 : vector<8x32xf32>
    %cst_10 = arith.constant dense<0.000000e+00> : vector<8x32xf32>
    %16 = tpu.matmul %15, %4, %cst_10 {dimension_numbers = #tpu.dot_dimension_numbers<[1], [0], [0], [1], [0, 0, 1, 1], [], []>, precision = #tpu.contract_precision<fp32>} : vector<8x32xf32>, vector<32x32xf32>, vector<8x32xf32> -> vector<8x32xf32>
    %c112 = arith.constant 112 : index
    %c0_11 = arith.constant 0 : index
    %17 = vector.load %arg2[%c112, %c0_11] : memref<160x32xf32, #tpu.memory_space<vmem>>, vector<1x32xf32>
    %18 = vector.broadcast %17 : vector<1x32xf32> to vector<8x32xf32>
    %19 = arith.addf %16, %18 : vector<8x32xf32>
    %cst_12 = arith.constant 0.000000e+00 : f32
    %20 = vector.broadcast %cst_12 : f32 to vector<8x32xf32>
    %21 = arith.maximumf %19, %20 : vector<8x32xf32>
    %cst_13 = arith.constant dense<0.000000e+00> : vector<8x32xf32>
    %22 = tpu.matmul %21, %2, %cst_13 {dimension_numbers = #tpu.dot_dimension_numbers<[1], [0], [0], [1], [0, 0, 1, 1], [], []>, precision = #tpu.contract_precision<fp32>} : vector<8x32xf32>, vector<32x32xf32>, vector<8x32xf32> -> vector<8x32xf32>
    %23 = vector.broadcast %3 : vector<1x32xf32> to vector<8x32xf32>
    %24 = arith.addf %22, %23 : vector<8x32xf32>
    %cst_14 = arith.constant 0.000000e+00 : f32
    %25 = vector.broadcast %cst_14 : f32 to vector<8x32xf32>
    %26 = arith.maximumf %24, %25 : vector<8x32xf32>
    %cst_15 = arith.constant dense<0.000000e+00> : vector<8x32xf32>
    %27 = tpu.matmul %26, %4, %cst_15 {dimension_numbers = #tpu.dot_dimension_numbers<[1], [0], [0], [1], [0, 0, 1, 1], [], []>, precision = #tpu.contract_precision<fp32>} : vector<8x32xf32>, vector<32x32xf32>, vector<8x32xf32> -> vector<8x32xf32>
    %c113 = arith.constant 113 : index
    %c0_16 = arith.constant 0 : index
    %28 = vector.load %arg2[%c113, %c0_16] : memref<160x32xf32, #tpu.memory_space<vmem>>, vector<1x32xf32>
    %29 = vector.broadcast %28 : vector<1x32xf32> to vector<8x32xf32>
    %30 = arith.addf %27, %29 : vector<8x32xf32>
    %cst_17 = arith.constant 0.000000e+00 : f32
    %31 = vector.broadcast %cst_17 : f32 to vector<8x32xf32>
    %32 = arith.maximumf %30, %31 : vector<8x32xf32>
    %cst_18 = arith.constant dense<0.000000e+00> : vector<8x32xf32>
    %33 = tpu.matmul %32, %2, %cst_18 {dimension_numbers = #tpu.dot_dimension_numbers<[1], [0], [0], [1], [0, 0, 1, 1], [], []>, precision = #tpu.contract_precision<fp32>} : vector<8x32xf32>, vector<32x32xf32>, vector<8x32xf32> -> vector<8x32xf32>
    %34 = vector.broadcast %3 : vector<1x32xf32> to vector<8x32xf32>
    %35 = arith.addf %33, %34 : vector<8x32xf32>
    %cst_19 = arith.constant 0.000000e+00 : f32
    %36 = vector.broadcast %cst_19 : f32 to vector<8x32xf32>
    %37 = arith.maximumf %35, %36 : vector<8x32xf32>
    %cst_20 = arith.constant dense<0.000000e+00> : vector<8x32xf32>
    %38 = tpu.matmul %37, %4, %cst_20 {dimension_numbers = #tpu.dot_dimension_numbers<[1], [0], [0], [1], [0, 0, 1, 1], [], []>, precision = #tpu.contract_precision<fp32>} : vector<8x32xf32>, vector<32x32xf32>, vector<8x32xf32> -> vector<8x32xf32>
    %c114 = arith.constant 114 : index
    %c0_21 = arith.constant 0 : index
    %39 = vector.load %arg2[%c114, %c0_21] : memref<160x32xf32, #tpu.memory_space<vmem>>, vector<1x32xf32>
    %40 = vector.broadcast %39 : vector<1x32xf32> to vector<8x32xf32>
    %41 = arith.addf %38, %40 : vector<8x32xf32>
    %cst_22 = arith.constant 0.000000e+00 : f32
    %42 = vector.broadcast %cst_22 : f32 to vector<8x32xf32>
    %43 = arith.maximumf %41, %42 : vector<8x32xf32>
    %cst_23 = arith.constant dense<0.000000e+00> : vector<8x32xf32>
    %44 = tpu.matmul %43, %2, %cst_23 {dimension_numbers = #tpu.dot_dimension_numbers<[1], [0], [0], [1], [0, 0, 1, 1], [], []>, precision = #tpu.contract_precision<fp32>} : vector<8x32xf32>, vector<32x32xf32>, vector<8x32xf32> -> vector<8x32xf32>
    %45 = vector.broadcast %3 : vector<1x32xf32> to vector<8x32xf32>
    %46 = arith.addf %44, %45 : vector<8x32xf32>
    %cst_24 = arith.constant 0.000000e+00 : f32
    %47 = vector.broadcast %cst_24 : f32 to vector<8x32xf32>
    %48 = arith.maximumf %46, %47 : vector<8x32xf32>
    %cst_25 = arith.constant dense<0.000000e+00> : vector<8x32xf32>
    %49 = tpu.matmul %48, %4, %cst_25 {dimension_numbers = #tpu.dot_dimension_numbers<[1], [0], [0], [1], [0, 0, 1, 1], [], []>, precision = #tpu.contract_precision<fp32>} : vector<8x32xf32>, vector<32x32xf32>, vector<8x32xf32> -> vector<8x32xf32>
    %c115 = arith.constant 115 : index
    %c0_26 = arith.constant 0 : index
    %50 = vector.load %arg2[%c115, %c0_26] : memref<160x32xf32, #tpu.memory_space<vmem>>, vector<1x32xf32>
    %51 = vector.broadcast %50 : vector<1x32xf32> to vector<8x32xf32>
    %52 = arith.addf %49, %51 : vector<8x32xf32>
    %c120 = arith.constant 120 : index
    %c0_27 = arith.constant 0 : index
    %53 = vector.load %arg2[%c120, %c0_27] : memref<160x32xf32, #tpu.memory_space<vmem>>, vector<32x32xf32>
    %c152 = arith.constant 152 : index
    %c0_28 = arith.constant 0 : index
    %54 = vector.load %arg2[%c152, %c0_28] : memref<160x32xf32, #tpu.memory_space<vmem>>, vector<1x32xf32>
    %cst_29 = arith.constant dense<0.000000e+00> : vector<8x32xf32>
    %55 = tpu.matmul %52, %53, %cst_29 {dimension_numbers = #tpu.dot_dimension_numbers<[1], [0], [0], [1], [0, 0, 1, 1], [], []>, precision = #tpu.contract_precision<fp32>} : vector<8x32xf32>, vector<32x32xf32>, vector<8x32xf32> -> vector<8x32xf32>
    %56 = vector.broadcast %54 : vector<1x32xf32> to vector<8x32xf32>
    %57 = arith.addf %55, %56 : vector<8x32xf32>
    %58 = vector.extract_strided_slice %57 {offsets = [0, 0], sizes = [8, 8], strides = [1, 1]} : vector<8x32xf32> to vector<8x8xf32>
    %c0_30 = arith.constant 0 : index
    %c0_31 = arith.constant 0 : index
    %59 = vector.load %arg3[%c0_30, %c0_31] : memref<8x8xf32, #tpu.memory_space<vmem>>, vector<8x8xf32>
    tpu.vector_store %arg3[%c0_30, %c0_31], %58 {strides = array<i32>} : memref<8x8xf32, #tpu.memory_space<vmem>>, vector<8x8xf32>,
    return
  }
  func.func @transform_0(%arg0: i32) -> (i32, i32) {
    %c0_i32 = arith.constant 0 : i32
    %c0_i32_0 = arith.constant 0 : i32
    return %arg0, %c0_i32 : i32, i32
  }
  func.func @transform_1(%arg0: i32) -> (i32, i32) {
    %c0_i32 = arith.constant 0 : i32
    %c0_i32_0 = arith.constant 0 : i32
    %c0_i32_1 = arith.constant 0 : i32
    return %c0_i32, %c0_i32_0 : i32, i32
  }
  func.func @transform_2(%arg0: i32) -> (i32, i32) {
    %c0_i32 = arith.constant 0 : i32
    %c0_i32_0 = arith.constant 0 : i32
    return %arg0, %c0_i32 : i32, i32
  }
}

</mosaic_0001>

<bundles_post_ra>
// kernel: forward.1
= control target key start
LH: loop header
LB: loop body
LE: loop exit
PB: predicated region body
PF: predicated region fallthrough
CT: control target
= control target key end

     0   :  { %7 = vsyncpa [#allocation3], 0  ;;  %s6822_s0 = inlined_call_operand.hbm [shape: f32[8,32], index: 0, kind: input, shape index: {}]   ;;  %s6823_s1 = inlined_call_operand.hbm [shape: f32[160,32], index: 1, kind: input, shape index: {}]   ;;  %s6824_s2 = inlined_call_operand.hbm [shape: f32[8,8], index: 2, kind: output, shape index: {}]  }
   0x1   :  { %8 = vsyncpa [#allocation6], 0 }
   0x2   :  { %9 = vsyncpa [#allocation4], 0  ;;  %s6038_s9 = smov [#allocation2]   ;;  %s6039_s11 = smov [#allocation5]  }
   0x3   :  { %s16_s10 = sshll.u32 %s6038_s9, 4  ;;  %s25_s12 = sshll.u32 %s6039_s11, 4  ;;  %s17_s10 = int_to_ptr.vmem [resolvable:$true] %s16_s10  ;;  %s26_s12 = int_to_ptr.vmem [resolvable:$true] %s25_s12 }
   0x4   :  { %s5980_s13 = scalar_lea.vmem %s17_s10, 128  ;;  %p5985_p1 = scmp.lt.s32.totalorder %s17_s10, %s17_s10 }
   0x5   :  { %p5981_p0 = scmp.ne.s32.totalorder %s17_s10, %s5980_s13  ;;  %p5986_p2 = scmp.lt.s32.totalorder %s5980_s13, %s5980_s13 }
   0x7   :  { %p5987_p3 = por %p5986_p2, %p5985_p1 }
   0x9   :  { %p5988_p4 = pnand %p5987_p3, %p5981_p0 }
   0xb   :  { %5991 = shalt.err (!%p5988_p4)
}
   0xc   :  { %19 = dma.hbm_to_vmem [thread:$0]  %s6822_s0, 128, %s17_s10, [#allocation3]  }
   0xd   :  { %s6000_s16 = scalar_lea.vmem %s26_s12, 2560  ;;  %p6005_p6 = scmp.lt.s32.totalorder %s26_s12, %s26_s12 }
   0xe   :  { %p6001_p5 = scmp.ne.s32.totalorder %s26_s12, %s6000_s16  ;;  %p6006_p7 = scmp.lt.s32.totalorder %s6000_s16, %s6000_s16 }
  0x10   :  { %p6007_p8 = por %p6006_p7, %p6005_p6 }
  0x12   :  { %p6008_p9 = pnand %p6007_p8, %p6001_p5 }
  0x14   :  { %6011 = shalt.err (!%p6008_p9)
}
  0x15   :  { %s6040_s17 = smov 128   ;;  %s6041_s18 = smov 8  }
  0x16   :  { %31 = dma.hbm_to_vmem [thread:$0]  %s6823_s1, 2560, %s26_s12, [#allocation6], %s6040_s17, %s6040_s17, %s6041_s18  }
  0x17   :  { %6032 = dma.done.wait [#allocation3], 128  }
  0x18   :  { %6033 = vsyncadd [#allocation3], 4294967168 }
  0x19   :  { %6034 = dma.done.wait [#allocation6], 2560  }
  0x1a   :  { %6035 = vsyncadd [#allocation6], 4294964736  ;;  %v6042_v0 = vmov 0.0   ;;  %vm6043_vm0 = vmmov 0   ;;  %vm57_vm1 = vcmask 261120   ;;  %v41_v1 = vld [vmem:[#allocation5 + $0x18] sm:$0xff] }
  0x1b   :  { %5304 = vmatprep.subr.mxu0 %v6042_v0  ;;  %5315 = vmatprep.subr.mxu1 %v6042_v0  ;;  %v40_v2 = vld [vmem:[#allocation5 + $0x10] sm:$0xff]  ;;  %v39_v3 = vld [vmem:[#allocation5 + $0x8] sm:$0xff]  ;;  %v6072_v4 = vand.u32 4294901760, %v41_v1  ;;  %v38_v7 = vld [vmem:[#allocation5] sm:$0xff]  ;;  %s6044_s0 = smov [#allocation7]   ;;  %vm4979_vm2 = vcmask 64512  }
  0x1c   :  { %5312 = vmatprep.mubr.msk.f32.mxu0 %vm6043_vm0, %v6042_v0  ;;  %5323 = vmatprep.mubr.msk.f32.mxu1 %vm6043_vm0, %v6042_v0  ;;  %v6074_v5 = vand.u32 4294901760, %v40_v2  ;;  %v6076_v6 = vand.u32 4294901760, %v39_v3  ;;  %v52_v8 = vld [vmem:[#allocation2] sm:$0xff]  ;;  %v6078_v9 = vand.u32 4294901760, %v38_v7  ;;  %v46_v32 = vld [vmem:[#allocation5 + $0x40] sm:$0xff]  ;;  %v44_v37 = vld [vmem:[#allocation5 + $0x30] sm:$0xff] }
  0x1d   :  { %v59_v10 = vsel %vm57_vm1, %v52_v8, 0  ;;  %5305 = vmatpush3.msra.mxu0 %v6072_v4  ;;  %v166_v11 = vsub.f32 %v41_v1, %v6072_v4  ;;  %v6139_v33 = vand.u32 4294901760, %v46_v32  ;;  %v45_v34 = vld [vmem:[#allocation5 + $0x38] sm:$0xff]  ;;  %v6154_v40 = vand.u32 4294901760, %v44_v37  ;;  %v43_v41 = vld [vmem:[#allocation5 + $0x28] sm:$0xff]  ;;  %s4987_s1 = sshll.u32 %s6044_s0, 4  ;;  %s4988_s1 = int_to_ptr.vmem [resolvable:$true] %s4987_s1 }
  0x1e   :  { %v6083_v12 = vand.u32 4294901760, %v59_v10  ;;  %v173_v13 = vsub.f32 %v40_v2, %v6074_v5  ;;  %v180_v14 = vsub.f32 %v39_v3, %v6076_v6  ;;  %5306 = vmatprep.subr.mxu0 %v6042_v0  ;;  %v187_v15 = vsub.f32 %v38_v7, %v6078_v9  ;;  %v4997_v59 = vld [vmem:[#allocation5 + $0x20] ss:$0 sm:$0xff]  ;;  %s6012_s21 = scalar_lea.vmem %s4988_s1, 128  ;;  %p6017_p11 = scmp.lt.s32.totalorder %s4988_s1, %s4988_s1 }
  0x1f   :  { %5307 = vmatpush3.msra.mxu0 %v6074_v5  ;;  %v167_v16 = vand.u32 4294901760, %v166_v11  ;;  %v6142_v35 = vsub.f32 %v46_v32, %v6139_v33  ;;  %v6144_v36 = vand.u32 4294901760, %v45_v34  ;;  %v6164_v44 = vsub.f32 %v44_v37, %v6154_v40  ;;  %p6013_p10 = scmp.ne.s32.totalorder %s4988_s1, %s6012_s21  ;;  %p6018_p12 = scmp.lt.s32.totalorder %s6012_s21, %s6012_s21 }
  0x20   :  { %v131_v17 = vsub.f32 %v59_v10, %v6083_v12  ;;  %v174_v18 = vand.u32 4294901760, %v173_v13  ;;  %v181_v19 = vand.u32 4294901760, %v180_v14  ;;  %5308 = vmatprep.subr.mxu0 %v6042_v0  ;;  %v188_v20 = vand.u32 4294901760, %v187_v15 }
  0x21   :  { %5309 = vmatpush3.msra.mxu0 %v6076_v6  ;;  %v168_v21 = vsub.f32 %v166_v11, %v167_v16  ;;  %v6149_v38 = vand.u32 4294901760, %v6142_v35  ;;  %v6152_v39 = vsub.f32 %v45_v34, %v6144_v36  ;;  %v6166_v45 = vand.u32 4294901760, %v43_v41  ;;  %p6019_p13 = por %p6018_p12, %p6017_p11 }
  0x22   :  { %v132_v22 = vand.u32 4294901760, %v131_v17  ;;  %v175_v23 = vsub.f32 %v173_v13, %v174_v18  ;;  %v182_v24 = vsub.f32 %v180_v14, %v181_v19  ;;  %5310 = vmatprep.subr.mxu0 %v6042_v0  ;;  %v189_v28 = vsub.f32 %v187_v15, %v188_v20 }
  0x23   :  { %5311 = vmatpush3.msra.mxu0 %v6078_v9  ;;  %v169_v25 = vand.u32 4294901760, %v168_v21  ;;  %v661_v42 = vsub.f32 %v6142_v35, %v6149_v38  ;;  %v6161_v43 = vand.u32 4294901760, %v6152_v39  ;;  %v6175_v48 = vand.u32 4294901760, %v6164_v44  ;;  %v50_v21 = vld [vmem:[#allocation5 + $0x60] sm:$0xff]  ;;  %p6020_p0 = pnand %p6019_p13, %p6013_p10 }
  0x24   :  { %v133_v26 = vsub.f32 %v131_v17, %v132_v22  ;;  %v176_v27 = vand.u32 4294901760, %v175_v23  ;;  %5326 = vmatprep.subr.mxu0 %v6042_v0  ;;  %v183_v30 = vand.u32 4294901760, %v182_v24  ;;  %v190_v31 = vand.u32 4294901760, %v189_v28  ;;  %v49_v24 = vld [vmem:[#allocation5 + $0x58] sm:$0xff]  ;;  %v48_v28 = vld [vmem:[#allocation5 + $0x50] sm:$0xff] }
  0x25   :  { %5316 = vmatpush3.msra.mxu1 %v169_v25  ;;  %v6170_v46 = vand.u32 4294901760, %v661_v42  ;;  %v668_v47 = vsub.f32 %v6152_v39, %v6161_v43  ;;  %v6178_v49 = vsub.f32 %v43_v41, %v6166_v45  ;;  %v675_v51 = vsub.f32 %v6164_v44, %v6175_v48 }
  0x26   :  { %v134_v29 = vand.u32 4294901760, %v133_v26  ;;  %5317 = vmatprep.subr.mxu1 %v6042_v0  ;;  %v6253_v23 = vand.u32 4294901760, %v50_v21  ;;  %v6275_v32 = vand.u32 4294901760, %v48_v28 }
  0x27   :  { %5318 = vmatpush3.msra.mxu1 %v176_v27  ;;  %v6183_v50 = vand.u32 4294901760, %v668_v47  ;;  %v6188_v52 = vand.u32 4294901760, %v6178_v49  ;;  %v6192_v53 = vand.u32 4294901760, %v675_v51  ;;  %v6263_v27 = vand.u32 4294901760, %v49_v24 }
  0x28   :  { %5313 = vmatmul.mubr.f32.vlgmr.msra.gmra.mxu0 %v134_v29  ;;  %5319 = vmatprep.subr.mxu1 %v6042_v0  ;;  %v6261_v26 = vsub.f32 %v50_v21, %v6253_v23  ;;  %v6287_v42 = vsub.f32 %v48_v28, %v6275_v32 }
  0x29   :  { %5327 = vmatpush3.msra.mxu0 %v166_v11  ;;  %5320 = vmatpush3.msra.mxu1 %v183_v30  ;;  %v682_v54 = vsub.f32 %v6178_v49, %v6188_v52 }
  0x2a   :  { %5328 = vmatprep.subr.mxu0 %v6042_v0  ;;  %5321 = vmatprep.subr.mxu1 %v6042_v0  ;;  %v6270_v30 = vand.u32 4294901760, %v6261_v26 }
  0x2b   :  { %5329 = vmatpush3.msra.mxu0 %v173_v13  ;;  %5322 = vmatpush3.msra.mxu1 %v190_v31  ;;  %v6198_v55 = vand.u32 4294901760, %v682_v54  ;;  %v6273_v31 = vsub.f32 %v49_v24, %v6263_v27  ;;  %v6297_v54 = vand.u32 4294901760, %v6287_v42 }
  0x2c   :  { %5330 = vmatprep.subr.mxu0 %v6042_v0  ;;  %5324 = vmatmul.mubr.f32.vlgmr.msra.gmra.mxu1 %v6083_v12  ;;  %v1162_v37 = vsub.f32 %v6261_v26, %v6270_v30 }
  0x2d   :  { %5331 = vmatpush3.msra.mxu0 %v180_v14  ;;  %5337 = vmatprep.subr.mxu1 %v6042_v0  ;;  %v6284_v41 = vand.u32 4294901760, %v6273_v31 }
  0x2e   :  { %5332 = vmatprep.subr.mxu0 %v6042_v0  ;;  %5338 = vmatpush3.msra.mxu1 %v6072_v4  ;;  %v6292_v47 = vand.u32 4294901760, %v1162_v37 }
  0x2f   :  { %5333 = vmatpush3.msra.mxu0 %v187_v15  ;;  %5334 = vmatprep.mubr.msk.f32.mxu0 %vm6043_vm0, %v6042_v0  ;;  %v1169_v51 = vsub.f32 %v6273_v31, %v6284_v41 }
  0x30   :  { %5339 = vmatprep.subr.mxu1 %v6042_v0  ;;  %5348 = vmatprep.subr.mxu0 %v6042_v0 }
  0x31   :  { %5335 = vmatmul.mubr.f32.vlgmr.msra.gmra.mxu0 %v131_v17  ;;  %5340 = vmatpush3.msra.mxu1 %v6074_v5 }
  0x32   :  { %5349 = vmatpush3.msra.mxu0 %v167_v16  ;;  %5341 = vmatprep.subr.mxu1 %v6042_v0 }
  0x33   :  { %5350 = vmatprep.subr.mxu0 %v6042_v0  ;;  %5342 = vmatpush3.msra.mxu1 %v6076_v6 }
  0x34   :  { %5351 = vmatpush3.msra.mxu0 %v174_v18  ;;  %5343 = vmatprep.subr.mxu1 %v6042_v0 }
  0x35   :  { %5352 = vmatprep.subr.mxu0 %v6042_v0  ;;  %5344 = vmatpush3.msra.mxu1 %v6078_v9 }
  0x36   :  { %5345 = vmatprep.mubr.msk.f32.mxu1 %vm6043_vm0, %v6042_v0  ;;  %5353 = vmatpush3.msra.mxu0 %v181_v19  ;;  %v51_v19 = vld [vmem:[#allocation5 + $0x68] sm:$0xff] }
  0x37   :  { %5346 = vmatmul.mubr.f32.vlgmr.msra.gmra.mxu1 %v132_v22  ;;  %5354 = vmatprep.subr.mxu0 %v6042_v0 }
  0x38   :  { %5359 = vmatprep.subr.mxu1 %v6042_v0  ;;  %5355 = vmatpush3.msra.mxu0 %v188_v20  ;;  %v6248_v20 = vand.u32 4294901760, %v51_v19 }
  0x39   :  { %5356 = vmatprep.mubr.msk.f32.mxu0 %vm6043_vm0, %v6042_v0  ;;  %5360 = vmatpush3.msra.mxu1 %v6072_v4 }
  0x3a   :  { %5357 = vmatmul.mubr.f32.vlgmr.msra.gmra.mxu0 %v6083_v12  ;;  %5361 = vmatprep.subr.mxu1 %v6042_v0  ;;  %v6251_v22 = vsub.f32 %v51_v19, %v6248_v20 }
  0x3b   :  { %5367 = vmatprep.mubr.msk.f32.mxu1 %vm6043_vm0, %v6042_v0  ;;  %5362 = vmatpush3.msra.mxu1 %v6074_v5 }
  0x3c   :  { %5370 = vmatprep.subr.mxu0 %v6042_v0  ;;  %5363 = vmatprep.subr.mxu1 %v6042_v0  ;;  %v6258_v25 = vand.u32 4294901760, %v6251_v22 }
  0x3d   :  { %5378 = vmatprep.mubr.msk.f32.mxu0 %vm6043_vm0, %v6042_v0  ;;  %5364 = vmatpush3.msra.mxu1 %v6076_v6 }
  0x3e   :  { %5365 = vmatprep.subr.mxu1 %v6042_v0  ;;  %5371 = vmatpush3.msra.mxu0 %v6139_v33  ;;  %v1155_v29 = vsub.f32 %v6251_v22, %v6258_v25 }
  0x3f   :  { %5366 = vmatpush3.msra.mxu1 %v6078_v9  ;;  %5372 = vmatprep.subr.mxu0 %v6042_v0 }
  0x40   :  { %5368 = vmatmul.mubr.f32.vlgmr.msra.gmra.mxu1 %v6083_v12  ;;  %5381 = vmatprep.subr.mxu1 %v6042_v0  ;;  %v6279_v34 = vand.u32 4294901760, %v1155_v29 }
  0x41   :  { %5389 = vmatprep.mubr.msk.f32.mxu1 %vm6043_vm0, %v6042_v0  ;;  %5373 = vmatpush3.msra.mxu0 %v6144_v36 }
  0x42   :  { %5374 = vmatprep.subr.mxu0 %v6042_v0  ;;  %5382 = vmatpush3.msra.mxu1 %v6170_v46 }
  0x43   :  { %5375 = vmatpush3.msra.mxu0 %v6154_v40  ;;  %5383 = vmatprep.subr.mxu1 %v6042_v0 }
  0x44   :  { %5376 = vmatprep.subr.mxu0 %v6042_v0  ;;  %5384 = vmatpush3.msra.mxu1 %v6183_v50 }
  0x45   :  { %5377 = vmatpush3.msra.mxu0 %v6166_v45  ;;  %5385 = vmatprep.subr.mxu1 %v6042_v0 }
  0x46   :  { %5392 = vmatprep.subr.mxu0 %v6042_v0  ;;  %5386 = vmatpush3.msra.mxu1 %v6192_v53 }
  0x47   :  { %5387 = vmatprep.subr.mxu1 %v6042_v0 }
  0x48   :  { %5388 = vmatpush3.msra.mxu1 %v6198_v55 }
  0x49   :  { %5403 = vmatprep.subr.mxu1 %v6042_v0 }
  0xe8   :  { %v136_v56 = vpop.f32.mrf.mxu0 }
  0xe9   :  { %v137_v62 = vadd.f32 %v4997_v59, %v136_v56  ;;  %v6301_v56 = vand.u32 4294901760, %v1169_v51 }
  0xea   :  { %v5314_v57 = vpop.f32.mrf.mxu0 }
  0xeb   :  { %v1176_v57 = vsub.f32 %v6287_v42, %v6297_v54 }
  0xec   :  { %v227_v58 = vpop.f32.mrf.mxu1 }
  0xed   :  { %v228_v1 = vadd.f32 %v227_v58, %v137_v62  ;;  %v6307_v58 = vand.u32 4294901760, %v1176_v57 }
  0xee   :  { %v5325_v60 = vpop.f32.mrf.mxu1 }
  0xf1   :  { %v307_v61 = vpop.f32.mrf.mxu0 }
  0xf2   :  { %v308_v4 = vadd.f32 %v307_v61, %v228_v1 }
  0xf3   :  { %v5336_v63 = vpop.f32.mrf.mxu0 }
  0xf7   :  { %v384_v2 = vpop.f32.mrf.mxu1 }
  0xf8   :  { %v385_v6 = vadd.f32 %v384_v2, %v308_v4  ;;  %v6312_v2 = vld [vmem:[#allocation5 + $0x48] ss:$0 sm:$0xff] }
  0xf9   :  { %v5347_v3 = vpop.f32.mrf.mxu1 }
  0xfa   :  { %v467_v5 = vpop.f32.mrf.mxu0 }
  0xfb   :  { %v468_v8 = vadd.f32 %v467_v5, %v385_v6 }
  0xfc   :  { %v5358_v7 = vpop.f32.mrf.mxu0 }
 0x100   :  { %v542_v9 = vpop.f32.mrf.mxu1 }
 0x101   :  { %v543_v10 = vadd.f32 %v542_v9, %v468_v8 }
 0x102   :  { %v5369_v11 = vpop.f32.mrf.mxu1 }
 0x103   :  { %v546_v12 = vmax.f32 %v543_v10, 0.0 }
 0x105   :  { %v552_v13 = vsel %vm57_vm1, %v546_v12, 0 }
 0x106   :  { %v623_v14 = vand.u32 4294901760, %v552_v13 }
 0x108   :  { %v624_v15 = vsub.f32 %v552_v13, %v623_v14  ;;  %5390 = vmatmul.mubr.f32.vlgmr.msra.gmra.mxu1 %v623_v14 }
 0x109   :  { %5404 = vmatpush3.msra.mxu1 %v6139_v33  ;;  %5411 = vmatprep.mubr.msk.f32.mxu1 %vm6043_vm0, %v6042_v0 }
 0x10a   :  { %5405 = vmatprep.subr.mxu1 %v6042_v0  ;;  %v625_v16 = vand.u32 4294901760, %v624_v15 }
 0x10b   :  { %5406 = vmatpush3.msra.mxu1 %v6144_v36 }
 0x10c   :  { %5407 = vmatprep.subr.mxu1 %v6042_v0  ;;  %v626_v17 = vsub.f32 %v624_v15, %v625_v16 }
 0x10d   :  { %5408 = vmatpush3.msra.mxu1 %v6154_v40 }
 0x10e   :  { %5409 = vmatprep.subr.mxu1 %v6042_v0  ;;  %v627_v18 = vand.u32 4294901760, %v626_v17 }
 0x10f   :  { %5410 = vmatpush3.msra.mxu1 %v6166_v45 }
 0x110   :  { %5412 = vmatmul.mubr.f32.vlgmr.msra.gmra.mxu1 %v625_v16  ;;  %5425 = vmatprep.subr.mxu1 %v6042_v0 }
 0x111   :  { %5379 = vmatmul.mubr.f32.vlgmr.msra.gmra.mxu0 %v627_v18  ;;  %5426 = vmatpush3.msra.mxu1 %v6139_v33 }
 0x112   :  { %5393 = vmatpush3.msra.mxu0 %v6142_v35  ;;  %5427 = vmatprep.subr.mxu1 %v6042_v0 }
 0x113   :  { %5394 = vmatprep.subr.mxu0 %v6042_v0  ;;  %5428 = vmatpush3.msra.mxu1 %v6144_v36 }
 0x114   :  { %5395 = vmatpush3.msra.mxu0 %v6152_v39  ;;  %5429 = vmatprep.subr.mxu1 %v6042_v0 }
 0x115   :  { %5396 = vmatprep.subr.mxu0 %v6042_v0  ;;  %5430 = vmatpush3.msra.mxu1 %v6154_v40 }
 0x116   :  { %5397 = vmatpush3.msra.mxu0 %v6164_v44  ;;  %5431 = vmatprep.subr.mxu1 %v6042_v0 }
 0x117   :  { %5398 = vmatprep.subr.mxu0 %v6042_v0  ;;  %5400 = vmatprep.mubr.msk.f32.mxu0 %vm6043_vm0, %v6042_v0 }
 0x118   :  { %5399 = vmatpush3.msra.mxu0 %v6178_v49  ;;  %5432 = vmatpush3.msra.mxu1 %v6166_v45 }
 0x119   :  { %5433 = vmatprep.mubr.msk.f32.mxu1 %vm6043_vm0, %v6042_v0  ;;  %5401 = vmatmul.mubr.f32.vlgmr.msra.gmra.mxu0 %v624_v15 }
 0x11a   :  { %5414 = vmatprep.subr.mxu0 %v6042_v0  ;;  %5434 = vmatmul.mubr.f32.vlgmr.msra.gmra.mxu1 %v623_v14 }
 0x11b   :  { %5415 = vmatpush3.msra.mxu0 %v6149_v38  ;;  %5422 = vmatprep.mubr.msk.f32.mxu0 %vm6043_vm0, %v6042_v0 }
 0x11c   :  { %5416 = vmatprep.subr.mxu0 %v6042_v0  ;;  %5447 = vmatprep.subr.mxu1 %v6042_v0 }
 0x11d   :  { %5417 = vmatpush3.msra.mxu0 %v6161_v43  ;;  %5455 = vmatprep.mubr.msk.f32.mxu1 %vm6043_vm0, %v6042_v0 }
 0x11e   :  { %5418 = vmatprep.subr.mxu0 %v6042_v0  ;;  %5448 = vmatpush3.msra.mxu1 %v6279_v34 }
 0x11f   :  { %5419 = vmatpush3.msra.mxu0 %v6175_v48  ;;  %5449 = vmatprep.subr.mxu1 %v6042_v0 }
 0x120   :  { %5420 = vmatprep.subr.mxu0 %v6042_v0  ;;  %5450 = vmatpush3.msra.mxu1 %v6292_v47 }
 0x121   :  { %5421 = vmatpush3.msra.mxu0 %v6188_v52  ;;  %5451 = vmatprep.subr.mxu1 %v6042_v0 }
 0x122   :  { %5423 = vmatmul.mubr.f32.vlgmr.msra.gmra.mxu0 %v623_v14  ;;  %5436 = vmatprep.subr.mxu0 %v6042_v0 }
 0x123   :  { %5444 = vmatprep.mubr.msk.f32.mxu0 %vm6043_vm0, %v6042_v0  ;;  %5437 = vmatpush3.msra.mxu0 %v6248_v20 }
 0x124   :  { %5438 = vmatprep.subr.mxu0 %v6042_v0  ;;  %5452 = vmatpush3.msra.mxu1 %v6301_v56 }
 0x125   :  { %5439 = vmatpush3.msra.mxu0 %v6253_v23  ;;  %5453 = vmatprep.subr.mxu1 %v6042_v0 }
 0x126   :  { %5440 = vmatprep.subr.mxu0 %v6042_v0  ;;  %5454 = vmatpush3.msra.mxu1 %v6307_v58 }
 0x127   :  { %5441 = vmatpush3.msra.mxu0 %v6263_v27  ;;  %5469 = vmatprep.subr.mxu1 %v6042_v0 }
 0x128   :  { %5442 = vmatprep.subr.mxu0 %v6042_v0 }
 0x129   :  { %5443 = vmatpush3.msra.mxu0 %v6275_v32 }
 0x12a   :  { %5458 = vmatprep.subr.mxu0 %v6042_v0 }
 0x1c8   :  { %v720_v59 = vpop.f32.mrf.mxu1 }
 0x1ca   :  { %v5391_v60 = vpop.f32.mrf.mxu1 }
 0x1cb   :  { %v4999_v60 = vld [vmem:[#allocation5 + $0x70] ss:$0 sm:$0xff] }
 0x1d0   :  { %v877_v61 = vpop.f32.mrf.mxu1 }
 0x1d1   :  { %v629_v62 = vpop.f32.mrf.mxu0 }
 0x1d2   :  { %v5413_v63 = vpop.f32.mrf.mxu1  ;;  %v630_v3 = vadd.f32 %v6312_v2, %v629_v62 }
 0x1d3   :  { %v5380_v1 = vpop.f32.mrf.mxu0 }
 0x1d4   :  { %v721_v6 = vadd.f32 %v720_v59, %v630_v3 }
 0x1d9   :  { %v800_v4 = vpop.f32.mrf.mxu0 }
 0x1da   :  { %v1035_v5 = vpop.f32.mrf.mxu1  ;;  %v801_v9 = vadd.f32 %v800_v4, %v721_v6 }
 0x1db   :  { %v5402_v7 = vpop.f32.mrf.mxu0 }
 0x1dc   :  { %v5435_v8 = vpop.f32.mrf.mxu1  ;;  %v878_v10 = vadd.f32 %v877_v61, %v801_v9 }
 0x1e2   :  { %v960_v11 = vpop.f32.mrf.mxu0 }
 0x1e3   :  { %v961_v12 = vadd.f32 %v960_v11, %v878_v10 }
 0x1e4   :  { %v5424_v13 = vpop.f32.mrf.mxu0 }
 0x1e5   :  { %v1036_v14 = vadd.f32 %v1035_v5, %v961_v12 }
 0x1e7   :  { %v1039_v15 = vmax.f32 %v1036_v14, 0.0 }
 0x1e9   :  { %v1046_v16 = vsel %vm57_vm1, %v1039_v15, 0 }
 0x1ea   :  { %v1117_v17 = vand.u32 4294901760, %v1046_v16 }
 0x1ec   :  { %v1118_v18 = vsub.f32 %v1046_v16, %v1117_v17  ;;  %5456 = vmatmul.mubr.f32.vlgmr.msra.gmra.mxu1 %v1117_v17 }
 0x1ed   :  { %5470 = vmatpush3.msra.mxu1 %v6248_v20  ;;  %5477 = vmatprep.mubr.msk.f32.mxu1 %vm6043_vm0, %v6042_v0 }
 0x1ee   :  { %5471 = vmatprep.subr.mxu1 %v6042_v0  ;;  %v1119_v19 = vand.u32 4294901760, %v1118_v18 }
 0x1ef   :  { %5472 = vmatpush3.msra.mxu1 %v6253_v23 }
 0x1f0   :  { %5473 = vmatprep.subr.mxu1 %v6042_v0  ;;  %v1120_v21 = vsub.f32 %v1118_v18, %v1119_v19 }
 0x1f1   :  { %5474 = vmatpush3.msra.mxu1 %v6263_v27 }
 0x1f2   :  { %5475 = vmatprep.subr.mxu1 %v6042_v0  ;;  %v1121_v24 = vand.u32 4294901760, %v1120_v21 }
 0x1f3   :  { %5476 = vmatpush3.msra.mxu1 %v6275_v32 }
 0x1f4   :  { %5478 = vmatmul.mubr.f32.vlgmr.msra.gmra.mxu1 %v1119_v19  ;;  %5491 = vmatprep.subr.mxu1 %v6042_v0 }
 0x1f5   :  { %5445 = vmatmul.mubr.f32.vlgmr.msra.gmra.mxu0 %v1121_v24  ;;  %5492 = vmatpush3.msra.mxu1 %v6248_v20 }
 0x1f6   :  { %5459 = vmatpush3.msra.mxu0 %v6251_v22  ;;  %5493 = vmatprep.subr.mxu1 %v6042_v0 }
 0x1f7   :  { %5460 = vmatprep.subr.mxu0 %v6042_v0  ;;  %5494 = vmatpush3.msra.mxu1 %v6253_v23 }
 0x1f8   :  { %5461 = vmatpush3.msra.mxu0 %v6261_v26  ;;  %5495 = vmatprep.subr.mxu1 %v6042_v0 }
 0x1f9   :  { %5462 = vmatprep.subr.mxu0 %v6042_v0  ;;  %5496 = vmatpush3.msra.mxu1 %v6263_v27 }
 0x1fa   :  { %5463 = vmatpush3.msra.mxu0 %v6273_v31  ;;  %5497 = vmatprep.subr.mxu1 %v6042_v0 }
 0x1fb   :  { %5464 = vmatprep.subr.mxu0 %v6042_v0  ;;  %5466 = vmatprep.mubr.msk.f32.mxu0 %vm6043_vm0, %v6042_v0 }
 0x1fc   :  { %5465 = vmatpush3.msra.mxu0 %v6287_v42  ;;  %5498 = vmatpush3.msra.mxu1 %v6275_v32 }
 0x1fd   :  { %5499 = vmatprep.mubr.msk.f32.mxu1 %vm6043_vm0, %v6042_v0  ;;  %5467 = vmatmul.mubr.f32.vlgmr.msra.gmra.mxu0 %v1118_v18 }
 0x1fe   :  { %5480 = vmatprep.subr.mxu0 %v6042_v0  ;;  %5500 = vmatmul.mubr.f32.vlgmr.msra.gmra.mxu1 %v1117_v17 }
 0x1ff   :  { %5481 = vmatpush3.msra.mxu0 %v6258_v25  ;;  %5488 = vmatprep.mubr.msk.f32.mxu0 %vm6043_vm0, %v6042_v0 }
 0x200   :  { %5482 = vmatprep.subr.mxu0 %v6042_v0  ;;  %5513 = vmatprep.subr.mxu1 %v6042_v0 }
 0x201   :  { %5483 = vmatpush3.msra.mxu0 %v6270_v30  ;;  %5514 = vmatpush3.msra.mxu1 %v6170_v46 }
 0x202   :  { %5484 = vmatprep.subr.mxu0 %v6042_v0  ;;  %5515 = vmatprep.subr.mxu1 %v6042_v0 }
 0x203   :  { %5485 = vmatpush3.msra.mxu0 %v6284_v41  ;;  %5516 = vmatpush3.msra.mxu1 %v6183_v50 }
 0x204   :  { %5486 = vmatprep.subr.mxu0 %v6042_v0  ;;  %5517 = vmatprep.subr.mxu1 %v6042_v0 }
 0x205   :  { %5487 = vmatpush3.msra.mxu0 %v6297_v54  ;;  %5518 = vmatpush3.msra.mxu1 %v6192_v53 }
 0x206   :  { %5489 = vmatmul.mubr.f32.vlgmr.msra.gmra.mxu0 %v1117_v17  ;;  %5519 = vmatprep.subr.mxu1 %v6042_v0 }
 0x207   :  { %5520 = vmatpush3.msra.mxu1 %v6198_v55  ;;  %5502 = vmatprep.subr.mxu0 %v6042_v0 }
 0x208   :  { %5521 = vmatprep.mubr.msk.f32.mxu1 %vm6043_vm0, %v6042_v0  ;;  %5535 = vmatprep.subr.mxu1 %v6042_v0 }
 0x209   :  { %5503 = vmatpush3.msra.mxu0 %v6139_v33  ;;  %5510 = vmatprep.mubr.msk.f32.mxu0 %vm6043_vm0, %v6042_v0 }
 0x20a   :  { %5504 = vmatprep.subr.mxu0 %v6042_v0 }
 0x20b   :  { %5505 = vmatpush3.msra.mxu0 %v6144_v36 }
 0x20c   :  { %5506 = vmatprep.subr.mxu0 %v6042_v0 }
 0x20d   :  { %5507 = vmatpush3.msra.mxu0 %v6154_v40 }
 0x20e   :  { %5508 = vmatprep.subr.mxu0 %v6042_v0 }
 0x20f   :  { %5509 = vmatpush3.msra.mxu0 %v6166_v45 }
 0x210   :  { %5524 = vmatprep.subr.mxu0 %v6042_v0 }
 0x2ac   :  { %v1214_v28 = vpop.f32.mrf.mxu1 }
 0x2ae   :  { %v5457_v29 = vpop.f32.mrf.mxu1 }
 0x2b4   :  { %v1371_v37 = vpop.f32.mrf.mxu1 }
 0x2b5   :  { %v1123_v51 = vpop.f32.mrf.mxu0 }
 0x2b6   :  { %v5479_v57 = vpop.f32.mrf.mxu1  ;;  %v1124_v61 = vadd.f32 %v4999_v60, %v1123_v51 }
 0x2b7   :  { %v5446_v59 = vpop.f32.mrf.mxu0 }
 0x2b8   :  { %v1215_v1 = vadd.f32 %v1214_v28, %v1124_v61 }
 0x2bd   :  { %v1294_v62 = vpop.f32.mrf.mxu0 }
 0x2be   :  { %v1529_v63 = vpop.f32.mrf.mxu1  ;;  %v1295_v5 = vadd.f32 %v1294_v62, %v1215_v1 }
 0x2bf   :  { %v5468_v3 = vpop.f32.mrf.mxu0 }
 0x2c0   :  { %v5501_v4 = vpop.f32.mrf.mxu1  ;;  %v1372_v6 = vadd.f32 %v1371_v37, %v1295_v5 }
 0x2c6   :  { %v1454_v7 = vpop.f32.mrf.mxu0 }
 0x2c7   :  { %v1455_v8 = vadd.f32 %v1454_v7, %v1372_v6 }
 0x2c8   :  { %v5490_v9 = vpop.f32.mrf.mxu0 }
 0x2c9   :  { %v1530_v10 = vadd.f32 %v1529_v63, %v1455_v8 }
 0x2cb   :  { %v1533_v11 = vmax.f32 %v1530_v10, 0.0 }
 0x2cd   :  { %v1535_v12 = vsel %vm57_vm1, %v1533_v11, 0 }
 0x2ce   :  { %v1606_v13 = vand.u32 4294901760, %v1535_v12 }
 0x2d0   :  { %v1607_v14 = vsub.f32 %v1535_v12, %v1606_v13  ;;  %5522 = vmatmul.mubr.f32.vlgmr.msra.gmra.mxu1 %v1606_v13 }
 0x2d1   :  { %5536 = vmatpush3.msra.mxu1 %v6139_v33  ;;  %5543 = vmatprep.mubr.msk.f32.mxu1 %vm6043_vm0, %v6042_v0 }
 0x2d2   :  { %5537 = vmatprep.subr.mxu1 %v6042_v0  ;;  %v1608_v15 = vand.u32 4294901760, %v1607_v14 }
 0x2d3   :  { %5538 = vmatpush3.msra.mxu1 %v6144_v36 }
 0x2d4   :  { %5539 = vmatprep.subr.mxu1 %v6042_v0  ;;  %v1609_v16 = vsub.f32 %v1607_v14, %v1608_v15 }
 0x2d5   :  { %5540 = vmatpush3.msra.mxu1 %v6154_v40 }
 0x2d6   :  { %5541 = vmatprep.subr.mxu1 %v6042_v0  ;;  %v1610_v17 = vand.u32 4294901760, %v1609_v16 }
 0x2d7   :  { %5542 = vmatpush3.msra.mxu1 %v6166_v45 }
 0x2d8   :  { %5544 = vmatmul.mubr.f32.vlgmr.msra.gmra.mxu1 %v1608_v15  ;;  %5557 = vmatprep.subr.mxu1 %v6042_v0 }
 0x2d9   :  { %5511 = vmatmul.mubr.f32.vlgmr.msra.gmra.mxu0 %v1610_v17  ;;  %5558 = vmatpush3.msra.mxu1 %v6139_v33 }
 0x2da   :  { %5525 = vmatpush3.msra.mxu0 %v6142_v35  ;;  %5559 = vmatprep.subr.mxu1 %v6042_v0 }
 0x2db   :  { %5526 = vmatprep.subr.mxu0 %v6042_v0  ;;  %5560 = vmatpush3.msra.mxu1 %v6144_v36 }
 0x2dc   :  { %5527 = vmatpush3.msra.mxu0 %v6152_v39  ;;  %5561 = vmatprep.subr.mxu1 %v6042_v0 }
 0x2dd   :  { %5528 = vmatprep.subr.mxu0 %v6042_v0  ;;  %5562 = vmatpush3.msra.mxu1 %v6154_v40 }
 0x2de   :  { %5529 = vmatpush3.msra.mxu0 %v6164_v44  ;;  %5563 = vmatprep.subr.mxu1 %v6042_v0 }
 0x2df   :  { %5530 = vmatprep.subr.mxu0 %v6042_v0  ;;  %5532 = vmatprep.mubr.msk.f32.mxu0 %vm6043_vm0, %v6042_v0 }
 0x2e0   :  { %5531 = vmatpush3.msra.mxu0 %v6178_v49  ;;  %5564 = vmatpush3.msra.mxu1 %v6166_v45 }
 0x2e1   :  { %5565 = vmatprep.mubr.msk.f32.mxu1 %vm6043_vm0, %v6042_v0  ;;  %5533 = vmatmul.mubr.f32.vlgmr.msra.gmra.mxu0 %v1607_v14 }
 0x2e2   :  { %5546 = vmatprep.subr.mxu0 %v6042_v0  ;;  %5566 = vmatmul.mubr.f32.vlgmr.msra.gmra.mxu1 %v1606_v13 }
 0x2e3   :  { %5547 = vmatpush3.msra.mxu0 %v6149_v38  ;;  %5554 = vmatprep.mubr.msk.f32.mxu0 %vm6043_vm0, %v6042_v0 }
 0x2e4   :  { %5548 = vmatprep.subr.mxu0 %v6042_v0  ;;  %5579 = vmatprep.subr.mxu1 %v6042_v0 }
 0x2e5   :  { %5549 = vmatpush3.msra.mxu0 %v6161_v43  ;;  %5580 = vmatpush3.msra.mxu1 %v6279_v34 }
 0x2e6   :  { %5550 = vmatprep.subr.mxu0 %v6042_v0  ;;  %5581 = vmatprep.subr.mxu1 %v6042_v0 }
 0x2e7   :  { %5551 = vmatpush3.msra.mxu0 %v6175_v48  ;;  %5582 = vmatpush3.msra.mxu1 %v6292_v47 }
 0x2e8   :  { %5552 = vmatprep.subr.mxu0 %v6042_v0  ;;  %5583 = vmatprep.subr.mxu1 %v6042_v0 }
 0x2e9   :  { %5553 = vmatpush3.msra.mxu0 %v6188_v52  ;;  %5584 = vmatpush3.msra.mxu1 %v6301_v56 }
 0x2ea   :  { %5555 = vmatmul.mubr.f32.vlgmr.msra.gmra.mxu0 %v1606_v13  ;;  %5585 = vmatprep.subr.mxu1 %v6042_v0 }
 0x2eb   :  { %5586 = vmatpush3.msra.mxu1 %v6307_v58  ;;  %5568 = vmatprep.subr.mxu0 %v6042_v0 }
 0x2ec   :  { %5587 = vmatprep.mubr.msk.f32.mxu1 %vm6043_vm0, %v6042_v0  ;;  %5601 = vmatprep.subr.mxu1 %v6042_v0 }
 0x2ed   :  { %5569 = vmatpush3.msra.mxu0 %v6248_v20  ;;  %5576 = vmatprep.mubr.msk.f32.mxu0 %vm6043_vm0, %v6042_v0 }
 0x2ee   :  { %5570 = vmatprep.subr.mxu0 %v6042_v0 }
 0x2ef   :  { %5571 = vmatpush3.msra.mxu0 %v6253_v23 }
 0x2f0   :  { %5572 = vmatprep.subr.mxu0 %v6042_v0 }
 0x2f1   :  { %5573 = vmatpush3.msra.mxu0 %v6263_v27 }
 0x2f2   :  { %5574 = vmatprep.subr.mxu0 %v6042_v0 }
 0x2f3   :  { %5575 = vmatpush3.msra.mxu0 %v6275_v32 }
 0x2f4   :  { %5590 = vmatprep.subr.mxu0 %v6042_v0 }
 0x390   :  { %v1703_v18 = vpop.f32.mrf.mxu1 }
 0x392   :  { %v5523_v19 = vpop.f32.mrf.mxu1 }
 0x393   :  { %v5000_v19 = vld [vmem:[#allocation5 + $0x71] ss:$0 sm:$0xff] }
 0x398   :  { %v1860_v21 = vpop.f32.mrf.mxu1 }
 0x399   :  { %v1612_v24 = vpop.f32.mrf.mxu0 }
 0x39a   :  { %v5545_v28 = vpop.f32.mrf.mxu1  ;;  %v1613_v37 = vadd.f32 %v6312_v2, %v1612_v24 }
 0x39b   :  { %v5512_v29 = vpop.f32.mrf.mxu0 }
 0x39c   :  { %v1704_v59 = vadd.f32 %v1703_v18, %v1613_v37 }
 0x3a1   :  { %v1783_v51 = vpop.f32.mrf.mxu0 }
 0x3a2   :  { %v2018_v57 = vpop.f32.mrf.mxu1  ;;  %v1784_v62 = vadd.f32 %v1783_v51, %v1704_v59 }
 0x3a3   :  { %v5534_v60 = vpop.f32.mrf.mxu0 }
 0x3a4   :  { %v5567_v61 = vpop.f32.mrf.mxu1  ;;  %v1861_v63 = vadd.f32 %v1860_v21, %v1784_v62 }
 0x3aa   :  { %v1943_v1 = vpop.f32.mrf.mxu0 }
 0x3ab   :  { %v1944_v3 = vadd.f32 %v1943_v1, %v1861_v63 }
 0x3ac   :  { %v5556_v4 = vpop.f32.mrf.mxu0 }
 0x3ad   :  { %v2019_v5 = vadd.f32 %v2018_v57, %v1944_v3 }
 0x3af   :  { %v2022_v6 = vmax.f32 %v2019_v5, 0.0 }
 0x3b1   :  { %v2029_v7 = vsel %vm57_vm1, %v2022_v6, 0 }
 0x3b2   :  { %v2100_v8 = vand.u32 4294901760, %v2029_v7 }
 0x3b4   :  { %v2101_v9 = vsub.f32 %v2029_v7, %v2100_v8  ;;  %5588 = vmatmul.mubr.f32.vlgmr.msra.gmra.mxu1 %v2100_v8 }
 0x3b5   :  { %5602 = vmatpush3.msra.mxu1 %v6248_v20  ;;  %5609 = vmatprep.mubr.msk.f32.mxu1 %vm6043_vm0, %v6042_v0 }
 0x3b6   :  { %5603 = vmatprep.subr.mxu1 %v6042_v0  ;;  %v2102_v10 = vand.u32 4294901760, %v2101_v9 }
 0x3b7   :  { %5604 = vmatpush3.msra.mxu1 %v6253_v23 }
 0x3b8   :  { %5605 = vmatprep.subr.mxu1 %v6042_v0  ;;  %v2103_v11 = vsub.f32 %v2101_v9, %v2102_v10 }
 0x3b9   :  { %5606 = vmatpush3.msra.mxu1 %v6263_v27 }
 0x3ba   :  { %5607 = vmatprep.subr.mxu1 %v6042_v0  ;;  %v2104_v12 = vand.u32 4294901760, %v2103_v11 }
 0x3bb   :  { %5608 = vmatpush3.msra.mxu1 %v6275_v32 }
 0x3bc   :  { %5610 = vmatmul.mubr.f32.vlgmr.msra.gmra.mxu1 %v2102_v10  ;;  %5623 = vmatprep.subr.mxu1 %v6042_v0 }
 0x3bd   :  { %5577 = vmatmul.mubr.f32.vlgmr.msra.gmra.mxu0 %v2104_v12  ;;  %5624 = vmatpush3.msra.mxu1 %v6248_v20 }
 0x3be   :  { %5591 = vmatpush3.msra.mxu0 %v6251_v22  ;;  %5625 = vmatprep.subr.mxu1 %v6042_v0 }
 0x3bf   :  { %5592 = vmatprep.subr.mxu0 %v6042_v0  ;;  %5626 = vmatpush3.msra.mxu1 %v6253_v23 }
 0x3c0   :  { %5593 = vmatpush3.msra.mxu0 %v6261_v26  ;;  %5627 = vmatprep.subr.mxu1 %v6042_v0 }
 0x3c1   :  { %5594 = vmatprep.subr.mxu0 %v6042_v0  ;;  %5628 = vmatpush3.msra.mxu1 %v6263_v27 }
 0x3c2   :  { %5595 = vmatpush3.msra.mxu0 %v6273_v31  ;;  %5629 = vmatprep.subr.mxu1 %v6042_v0 }
 0x3c3   :  { %5596 = vmatprep.subr.mxu0 %v6042_v0  ;;  %5598 = vmatprep.mubr.msk.f32.mxu0 %vm6043_vm0, %v6042_v0 }
 0x3c4   :  { %5597 = vmatpush3.msra.mxu0 %v6287_v42  ;;  %5630 = vmatpush3.msra.mxu1 %v6275_v32 }
 0x3c5   :  { %5631 = vmatprep.mubr.msk.f32.mxu1 %vm6043_vm0, %v6042_v0  ;;  %5599 = vmatmul.mubr.f32.vlgmr.msra.gmra.mxu0 %v2101_v9 }
 0x3c6   :  { %5612 = vmatprep.subr.mxu0 %v6042_v0  ;;  %5632 = vmatmul.mubr.f32.vlgmr.msra.gmra.mxu1 %v2100_v8 }
 0x3c7   :  { %5613 = vmatpush3.msra.mxu0 %v6258_v25  ;;  %5620 = vmatprep.mubr.msk.f32.mxu0 %vm6043_vm0, %v6042_v0 }
 0x3c8   :  { %5614 = vmatprep.subr.mxu0 %v6042_v0  ;;  %5645 = vmatprep.subr.mxu1 %v6042_v0 }
 0x3c9   :  { %5615 = vmatpush3.msra.mxu0 %v6270_v30  ;;  %5646 = vmatpush3.msra.mxu1 %v6170_v46 }
 0x3ca   :  { %5616 = vmatprep.subr.mxu0 %v6042_v0  ;;  %5647 = vmatprep.subr.mxu1 %v6042_v0 }
 0x3cb   :  { %5617 = vmatpush3.msra.mxu0 %v6284_v41  ;;  %5648 = vmatpush3.msra.mxu1 %v6183_v50 }
 0x3cc   :  { %5618 = vmatprep.subr.mxu0 %v6042_v0  ;;  %5649 = vmatprep.subr.mxu1 %v6042_v0 }
 0x3cd   :  { %5619 = vmatpush3.msra.mxu0 %v6297_v54  ;;  %5650 = vmatpush3.msra.mxu1 %v6192_v53 }
 0x3ce   :  { %5621 = vmatmul.mubr.f32.vlgmr.msra.gmra.mxu0 %v2100_v8  ;;  %5651 = vmatprep.subr.mxu1 %v6042_v0 }
 0x3cf   :  { %5652 = vmatpush3.msra.mxu1 %v6198_v55  ;;  %5634 = vmatprep.subr.mxu0 %v6042_v0 }
 0x3d0   :  { %5653 = vmatprep.mubr.msk.f32.mxu1 %vm6043_vm0, %v6042_v0  ;;  %5667 = vmatprep.subr.mxu1 %v6042_v0 }
 0x3d1   :  { %5635 = vmatpush3.msra.mxu0 %v6139_v33  ;;  %5642 = vmatprep.mubr.msk.f32.mxu0 %vm6043_vm0, %v6042_v0 }
 0x3d2   :  { %5636 = vmatprep.subr.mxu0 %v6042_v0 }
 0x3d3   :  { %5637 = vmatpush3.msra.mxu0 %v6144_v36 }
 0x3d4   :  { %5638 = vmatprep.subr.mxu0 %v6042_v0 }
 0x3d5   :  { %5639 = vmatpush3.msra.mxu0 %v6154_v40 }
 0x3d6   :  { %5640 = vmatprep.subr.mxu0 %v6042_v0 }
 0x3d7   :  { %5641 = vmatpush3.msra.mxu0 %v6166_v45 }
 0x3d8   :  { %5656 = vmatprep.subr.mxu0 %v6042_v0 }
 0x474   :  { %v2197_v13 = vpop.f32.mrf.mxu1 }
 0x476   :  { %v5589_v14 = vpop.f32.mrf.mxu1 }
 0x47c   :  { %v2354_v15 = vpop.f32.mrf.mxu1 }
 0x47d   :  { %v2106_v16 = vpop.f32.mrf.mxu0 }
 0x47e   :  { %v5611_v17 = vpop.f32.mrf.mxu1  ;;  %v2107_v21 = vadd.f32 %v5000_v19, %v2106_v16 }
 0x47f   :  { %v5578_v18 = vpop.f32.mrf.mxu0 }
 0x480   :  { %v2198_v29 = vadd.f32 %v2197_v13, %v2107_v21 }
 0x485   :  { %v2277_v24 = vpop.f32.mrf.mxu0 }
 0x486   :  { %v2512_v28 = vpop.f32.mrf.mxu1  ;;  %v2278_v57 = vadd.f32 %v2277_v24, %v2198_v29 }
 0x487   :  { %v5600_v37 = vpop.f32.mrf.mxu0 }
 0x488   :  { %v5633_v51 = vpop.f32.mrf.mxu1  ;;  %v2355_v59 = vadd.f32 %v2354_v15, %v2278_v57 }
 0x48e   :  { %v2437_v60 = vpop.f32.mrf.mxu0 }
 0x48f   :  { %v2438_v61 = vadd.f32 %v2437_v60, %v2355_v59 }
 0x490   :  { %v5622_v62 = vpop.f32.mrf.mxu0 }
 0x491   :  { %v2513_v63 = vadd.f32 %v2512_v28, %v2438_v61 }
 0x493   :  { %v2516_v1 = vmax.f32 %v2513_v63, 0.0 }
 0x495   :  { %v2518_v3 = vsel %vm57_vm1, %v2516_v1, 0 }
 0x496   :  { %v2589_v4 = vand.u32 4294901760, %v2518_v3 }
 0x498   :  { %v2590_v5 = vsub.f32 %v2518_v3, %v2589_v4  ;;  %5654 = vmatmul.mubr.f32.vlgmr.msra.gmra.mxu1 %v2589_v4 }
 0x499   :  { %5668 = vmatpush3.msra.mxu1 %v6139_v33  ;;  %5675 = vmatprep.mubr.msk.f32.mxu1 %vm6043_vm0, %v6042_v0 }
 0x49a   :  { %5669 = vmatprep.subr.mxu1 %v6042_v0  ;;  %v2591_v6 = vand.u32 4294901760, %v2590_v5 }
 0x49b   :  { %5670 = vmatpush3.msra.mxu1 %v6144_v36 }
 0x49c   :  { %5671 = vmatprep.subr.mxu1 %v6042_v0  ;;  %v2592_v7 = vsub.f32 %v2590_v5, %v2591_v6 }
 0x49d   :  { %5672 = vmatpush3.msra.mxu1 %v6154_v40 }
 0x49e   :  { %5673 = vmatprep.subr.mxu1 %v6042_v0  ;;  %v2593_v8 = vand.u32 4294901760, %v2592_v7 }
 0x49f   :  { %5674 = vmatpush3.msra.mxu1 %v6166_v45 }
 0x4a0   :  { %5676 = vmatmul.mubr.f32.vlgmr.msra.gmra.mxu1 %v2591_v6  ;;  %5689 = vmatprep.subr.mxu1 %v6042_v0 }
 0x4a1   :  { %5643 = vmatmul.mubr.f32.vlgmr.msra.gmra.mxu0 %v2593_v8  ;;  %5690 = vmatpush3.msra.mxu1 %v6139_v33 }
 0x4a2   :  { %5657 = vmatpush3.msra.mxu0 %v6142_v35  ;;  %5691 = vmatprep.subr.mxu1 %v6042_v0 }
 0x4a3   :  { %5658 = vmatprep.subr.mxu0 %v6042_v0  ;;  %5692 = vmatpush3.msra.mxu1 %v6144_v36 }
 0x4a4   :  { %5659 = vmatpush3.msra.mxu0 %v6152_v39  ;;  %5693 = vmatprep.subr.mxu1 %v6042_v0 }
 0x4a5   :  { %5660 = vmatprep.subr.mxu0 %v6042_v0  ;;  %5694 = vmatpush3.msra.mxu1 %v6154_v40 }
 0x4a6   :  { %5661 = vmatpush3.msra.mxu0 %v6164_v44  ;;  %5695 = vmatprep.subr.mxu1 %v6042_v0 }
 0x4a7   :  { %5662 = vmatprep.subr.mxu0 %v6042_v0  ;;  %5664 = vmatprep.mubr.msk.f32.mxu0 %vm6043_vm0, %v6042_v0 }
 0x4a8   :  { %5663 = vmatpush3.msra.mxu0 %v6178_v49  ;;  %5696 = vmatpush3.msra.mxu1 %v6166_v45 }
 0x4a9   :  { %5697 = vmatprep.mubr.msk.f32.mxu1 %vm6043_vm0, %v6042_v0  ;;  %5665 = vmatmul.mubr.f32.vlgmr.msra.gmra.mxu0 %v2590_v5  ;;  %v5001_v5 = vld [vmem:[#allocation5 + $0x72] ss:$0 sm:$0xff] }
 0x4aa   :  { %5678 = vmatprep.subr.mxu0 %v6042_v0  ;;  %5698 = vmatmul.mubr.f32.vlgmr.msra.gmra.mxu1 %v2589_v4 }
 0x4ab   :  { %5679 = vmatpush3.msra.mxu0 %v6149_v38  ;;  %5686 = vmatprep.mubr.msk.f32.mxu0 %vm6043_vm0, %v6042_v0 }
 0x4ac   :  { %5680 = vmatprep.subr.mxu0 %v6042_v0  ;;  %5711 = vmatprep.subr.mxu1 %v6042_v0 }
 0x4ad   :  { %5681 = vmatpush3.msra.mxu0 %v6161_v43  ;;  %5712 = vmatpush3.msra.mxu1 %v6279_v34 }
 0x4ae   :  { %5682 = vmatprep.subr.mxu0 %v6042_v0  ;;  %5713 = vmatprep.subr.mxu1 %v6042_v0 }
 0x4af   :  { %5683 = vmatpush3.msra.mxu0 %v6175_v48  ;;  %5714 = vmatpush3.msra.mxu1 %v6292_v47 }
 0x4b0   :  { %5684 = vmatprep.subr.mxu0 %v6042_v0  ;;  %5715 = vmatprep.subr.mxu1 %v6042_v0 }
 0x4b1   :  { %5685 = vmatpush3.msra.mxu0 %v6188_v52  ;;  %5716 = vmatpush3.msra.mxu1 %v6301_v56 }
 0x4b2   :  { %5687 = vmatmul.mubr.f32.vlgmr.msra.gmra.mxu0 %v2589_v4  ;;  %5717 = vmatprep.subr.mxu1 %v6042_v0 }
 0x4b3   :  { %5718 = vmatpush3.msra.mxu1 %v6307_v58  ;;  %5700 = vmatprep.subr.mxu0 %v6042_v0 }
 0x4b4   :  { %5719 = vmatprep.mubr.msk.f32.mxu1 %vm6043_vm0, %v6042_v0  ;;  %5733 = vmatprep.subr.mxu1 %v6042_v0 }
 0x4b5   :  { %5701 = vmatpush3.msra.mxu0 %v6248_v20  ;;  %5708 = vmatprep.mubr.msk.f32.mxu0 %vm6043_vm0, %v6042_v0 }
 0x4b6   :  { %5702 = vmatprep.subr.mxu0 %v6042_v0 }
 0x4b7   :  { %5703 = vmatpush3.msra.mxu0 %v6253_v23 }
 0x4b8   :  { %5704 = vmatprep.subr.mxu0 %v6042_v0 }
 0x4b9   :  { %5705 = vmatpush3.msra.mxu0 %v6263_v27 }
 0x4ba   :  { %5706 = vmatprep.subr.mxu0 %v6042_v0 }
 0x4bb   :  { %5707 = vmatpush3.msra.mxu0 %v6275_v32 }
 0x4bc   :  { %5722 = vmatprep.subr.mxu0 %v6042_v0 }
 0x558   :  { %v2686_v9 = vpop.f32.mrf.mxu1 }
 0x55a   :  { %v5655_v10 = vpop.f32.mrf.mxu1 }
 0x560   :  { %v2843_v11 = vpop.f32.mrf.mxu1 }
 0x561   :  { %v2595_v12 = vpop.f32.mrf.mxu0 }
 0x562   :  { %v5677_v13 = vpop.f32.mrf.mxu1  ;;  %v2596_v15 = vadd.f32 %v6312_v2, %v2595_v12 }
 0x563   :  { %v5644_v14 = vpop.f32.mrf.mxu0 }
 0x564   :  { %v2687_v18 = vadd.f32 %v2686_v9, %v2596_v15 }
 0x569   :  { %v2766_v16 = vpop.f32.mrf.mxu0 }
 0x56a   :  { %v3001_v17 = vpop.f32.mrf.mxu1  ;;  %v2767_v24 = vadd.f32 %v2766_v16, %v2687_v18 }
 0x56b   :  { %v5666_v19 = vpop.f32.mrf.mxu0 }
 0x56c   :  { %v5699_v21 = vpop.f32.mrf.mxu1  ;;  %v2844_v28 = vadd.f32 %v2843_v11, %v2767_v24 }
 0x572   :  { %v2926_v29 = vpop.f32.mrf.mxu0 }
 0x573   :  { %v2927_v37 = vadd.f32 %v2926_v29, %v2844_v28 }
 0x574   :  { %v5688_v51 = vpop.f32.mrf.mxu0 }
 0x575   :  { %v3002_v57 = vadd.f32 %v3001_v17, %v2927_v37 }
 0x577   :  { %v3005_v59 = vmax.f32 %v3002_v57, 0.0 }
 0x579   :  { %v3012_v60 = vsel %vm57_vm1, %v3005_v59, 0 }
 0x57a   :  { %v3083_v61 = vand.u32 4294901760, %v3012_v60 }
 0x57c   :  { %v3084_v62 = vsub.f32 %v3012_v60, %v3083_v61  ;;  %5720 = vmatmul.mubr.f32.vlgmr.msra.gmra.mxu1 %v3083_v61 }
 0x57d   :  { %5734 = vmatpush3.msra.mxu1 %v6248_v20  ;;  %5741 = vmatprep.mubr.msk.f32.mxu1 %vm6043_vm0, %v6042_v0 }
 0x57e   :  { %5735 = vmatprep.subr.mxu1 %v6042_v0  ;;  %v3085_v2 = vand.u32 4294901760, %v3084_v62 }
 0x57f   :  { %5736 = vmatpush3.msra.mxu1 %v6253_v23 }
 0x580   :  { %5737 = vmatprep.subr.mxu1 %v6042_v0  ;;  %v3086_v63 = vsub.f32 %v3084_v62, %v3085_v2 }
 0x581   :  { %5738 = vmatpush3.msra.mxu1 %v6263_v27 }
 0x582   :  { %5739 = vmatprep.subr.mxu1 %v6042_v0  ;;  %v3087_v1 = vand.u32 4294901760, %v3086_v63 }
 0x583   :  { %5740 = vmatpush3.msra.mxu1 %v6275_v32 }
 0x584   :  { %5742 = vmatmul.mubr.f32.vlgmr.msra.gmra.mxu1 %v3085_v2  ;;  %5755 = vmatprep.subr.mxu1 %v6042_v0 }
 0x585   :  { %5709 = vmatmul.mubr.f32.vlgmr.msra.gmra.mxu0 %v3087_v1  ;;  %5756 = vmatpush3.msra.mxu1 %v6248_v20 }
 0x586   :  { %5723 = vmatpush3.msra.mxu0 %v6251_v22  ;;  %5757 = vmatprep.subr.mxu1 %v6042_v0 }
 0x587   :  { %5724 = vmatprep.subr.mxu0 %v6042_v0  ;;  %5758 = vmatpush3.msra.mxu1 %v6253_v23 }
 0x588   :  { %5725 = vmatpush3.msra.mxu0 %v6261_v26  ;;  %5759 = vmatprep.subr.mxu1 %v6042_v0 }
 0x589   :  { %5726 = vmatprep.subr.mxu0 %v6042_v0  ;;  %5760 = vmatpush3.msra.mxu1 %v6263_v27 }
 0x58a   :  { %5727 = vmatpush3.msra.mxu0 %v6273_v31  ;;  %5761 = vmatprep.subr.mxu1 %v6042_v0 }
 0x58b   :  { %5728 = vmatprep.subr.mxu0 %v6042_v0  ;;  %5730 = vmatprep.mubr.msk.f32.mxu0 %vm6043_vm0, %v6042_v0 }
 0x58c   :  { %5729 = vmatpush3.msra.mxu0 %v6287_v42  ;;  %5762 = vmatpush3.msra.mxu1 %v6275_v32 }
 0x58d   :  { %5763 = vmatprep.mubr.msk.f32.mxu1 %vm6043_vm0, %v6042_v0  ;;  %5731 = vmatmul.mubr.f32.vlgmr.msra.gmra.mxu0 %v3084_v62 }
 0x58e   :  { %5744 = vmatprep.subr.mxu0 %v6042_v0  ;;  %5764 = vmatmul.mubr.f32.vlgmr.msra.gmra.mxu1 %v3083_v61 }
 0x58f   :  { %5745 = vmatpush3.msra.mxu0 %v6258_v25  ;;  %5752 = vmatprep.mubr.msk.f32.mxu0 %vm6043_vm0, %v6042_v0 }
 0x590   :  { %5746 = vmatprep.subr.mxu0 %v6042_v0  ;;  %5777 = vmatprep.subr.mxu1 %v6042_v0 }
 0x591   :  { %5747 = vmatpush3.msra.mxu0 %v6270_v30  ;;  %5778 = vmatpush3.msra.mxu1 %v6170_v46 }
 0x592   :  { %5748 = vmatprep.subr.mxu0 %v6042_v0  ;;  %5779 = vmatprep.subr.mxu1 %v6042_v0 }
 0x593   :  { %5749 = vmatpush3.msra.mxu0 %v6284_v41  ;;  %5780 = vmatpush3.msra.mxu1 %v6183_v50 }
 0x594   :  { %5750 = vmatprep.subr.mxu0 %v6042_v0  ;;  %5781 = vmatprep.subr.mxu1 %v6042_v0 }
 0x595   :  { %5751 = vmatpush3.msra.mxu0 %v6297_v54  ;;  %5782 = vmatpush3.msra.mxu1 %v6192_v53 }
 0x596   :  { %5753 = vmatmul.mubr.f32.vlgmr.msra.gmra.mxu0 %v3083_v61  ;;  %5783 = vmatprep.subr.mxu1 %v6042_v0 }
 0x597   :  { %5784 = vmatpush3.msra.mxu1 %v6198_v55  ;;  %5766 = vmatprep.subr.mxu0 %v6042_v0 }
 0x598   :  { %5785 = vmatprep.mubr.msk.f32.mxu1 %vm6043_vm0, %v6042_v0  ;;  %5799 = vmatprep.subr.mxu1 %v6042_v0 }
 0x599   :  { %5767 = vmatpush3.msra.mxu0 %v6139_v33  ;;  %5774 = vmatprep.mubr.msk.f32.mxu0 %vm6043_vm0, %v6042_v0 }
 0x59a   :  { %5768 = vmatprep.subr.mxu0 %v6042_v0 }
 0x59b   :  { %5769 = vmatpush3.msra.mxu0 %v6144_v36 }
 0x59c   :  { %5770 = vmatprep.subr.mxu0 %v6042_v0 }
 0x59d   :  { %5771 = vmatpush3.msra.mxu0 %v6154_v40 }
 0x59e   :  { %5772 = vmatprep.subr.mxu0 %v6042_v0 }
 0x59f   :  { %5773 = vmatpush3.msra.mxu0 %v6166_v45 }
 0x5a0   :  { %5788 = vmatprep.subr.mxu0 %v6042_v0 }
 0x63c   :  { %v3180_v46 = vpop.f32.mrf.mxu1 }
 0x63e   :  { %v5721_v50 = vpop.f32.mrf.mxu1 }
 0x644   :  { %v3337_v53 = vpop.f32.mrf.mxu1 }
 0x645   :  { %v3089_v55 = vpop.f32.mrf.mxu0 }
 0x646   :  { %v5743_v3 = vpop.f32.mrf.mxu1  ;;  %v3090_v6 = vadd.f32 %v5001_v5, %v3089_v55 }
 0x647   :  { %v5710_v4 = vpop.f32.mrf.mxu0 }
 0x648   :  { %v3181_v9 = vadd.f32 %v3180_v46, %v3090_v6 }
 0x64d   :  { %v3260_v7 = vpop.f32.mrf.mxu0 }
 0x64e   :  { %v3495_v8 = vpop.f32.mrf.mxu1  ;;  %v3261_v12 = vadd.f32 %v3260_v7, %v3181_v9 }
 0x64f   :  { %v5732_v10 = vpop.f32.mrf.mxu0 }
 0x650   :  { %v5765_v11 = vpop.f32.mrf.mxu1  ;;  %v3338_v13 = vadd.f32 %v3337_v53, %v3261_v12 }
 0x656   :  { %v3420_v14 = vpop.f32.mrf.mxu0 }
 0x657   :  { %v3421_v15 = vadd.f32 %v3420_v14, %v3338_v13 }
 0x658   :  { %v5754_v16 = vpop.f32.mrf.mxu0 }
 0x659   :  { %v3496_v17 = vadd.f32 %v3495_v8, %v3421_v15 }
 0x65b   :  { %v3499_v18 = vmax.f32 %v3496_v17, 0.0 }
 0x65d   :  { %v3501_v19 = vsel %vm57_vm1, %v3499_v18, 0  ;;  %v5002_v18 = vld [vmem:[#allocation5 + $0x73] ss:$0 sm:$0xff] }
 0x65e   :  { %v3572_v21 = vand.u32 4294901760, %v3501_v19 }
 0x660   :  { %v3573_v24 = vsub.f32 %v3501_v19, %v3572_v21  ;;  %5786 = vmatmul.mubr.f32.vlgmr.msra.gmra.mxu1 %v3572_v21 }
 0x661   :  { %5800 = vmatpush3.msra.mxu1 %v6139_v33  ;;  %5807 = vmatprep.mubr.msk.f32.mxu1 %vm6043_vm0, %v6042_v0 }
 0x662   :  { %5801 = vmatprep.subr.mxu1 %v6042_v0  ;;  %v3574_v28 = vand.u32 4294901760, %v3573_v24 }
 0x663   :  { %5802 = vmatpush3.msra.mxu1 %v6144_v36 }
 0x664   :  { %5803 = vmatprep.subr.mxu1 %v6042_v0  ;;  %v3575_v29 = vsub.f32 %v3573_v24, %v3574_v28 }
 0x665   :  { %5804 = vmatpush3.msra.mxu1 %v6154_v40 }
 0x666   :  { %5805 = vmatprep.subr.mxu1 %v6042_v0  ;;  %v3576_v37 = vand.u32 4294901760, %v3575_v29 }
 0x667   :  { %5806 = vmatpush3.msra.mxu1 %v6166_v45 }
 0x668   :  { %5808 = vmatmul.mubr.f32.vlgmr.msra.gmra.mxu1 %v3574_v28  ;;  %5821 = vmatprep.subr.mxu1 %v6042_v0 }
 0x669   :  { %5775 = vmatmul.mubr.f32.vlgmr.msra.gmra.mxu0 %v3576_v37  ;;  %5822 = vmatpush3.msra.mxu1 %v6139_v33 }
 0x66a   :  { %5789 = vmatpush3.msra.mxu0 %v6142_v35  ;;  %5823 = vmatprep.subr.mxu1 %v6042_v0 }
 0x66b   :  { %5790 = vmatprep.subr.mxu0 %v6042_v0  ;;  %5824 = vmatpush3.msra.mxu1 %v6144_v36 }
 0x66c   :  { %5791 = vmatpush3.msra.mxu0 %v6152_v39  ;;  %5825 = vmatprep.subr.mxu1 %v6042_v0 }
 0x66d   :  { %5792 = vmatprep.subr.mxu0 %v6042_v0  ;;  %5826 = vmatpush3.msra.mxu1 %v6154_v40 }
 0x66e   :  { %5793 = vmatpush3.msra.mxu0 %v6164_v44  ;;  %5827 = vmatprep.subr.mxu1 %v6042_v0 }
 0x66f   :  { %5794 = vmatprep.subr.mxu0 %v6042_v0  ;;  %5796 = vmatprep.mubr.msk.f32.mxu0 %vm6043_vm0, %v6042_v0 }
 0x670   :  { %5795 = vmatpush3.msra.mxu0 %v6178_v49  ;;  %5828 = vmatpush3.msra.mxu1 %v6166_v45 }
 0x671   :  { %5829 = vmatprep.mubr.msk.f32.mxu1 %vm6043_vm0, %v6042_v0  ;;  %5797 = vmatmul.mubr.f32.vlgmr.msra.gmra.mxu0 %v3573_v24 }
 0x672   :  { %5810 = vmatprep.subr.mxu0 %v6042_v0  ;;  %5830 = vmatmul.mubr.f32.vlgmr.msra.gmra.mxu1 %v3572_v21 }
 0x673   :  { %5811 = vmatpush3.msra.mxu0 %v6149_v38  ;;  %5818 = vmatprep.mubr.msk.f32.mxu0 %vm6043_vm0, %v6042_v0 }
 0x674   :  { %5812 = vmatprep.subr.mxu0 %v6042_v0  ;;  %5843 = vmatprep.subr.mxu1 %v6042_v0 }
 0x675   :  { %5813 = vmatpush3.msra.mxu0 %v6161_v43  ;;  %5844 = vmatpush3.msra.mxu1 %v6279_v34  ;;  %v5971_v43 = vld [vmem:[#allocation5 + $0x48] ss:$0 sm:$0xff] }
 0x676   :  { %5814 = vmatprep.subr.mxu0 %v6042_v0  ;;  %5845 = vmatprep.subr.mxu1 %v6042_v0 }
 0x677   :  { %5815 = vmatpush3.msra.mxu0 %v6175_v48  ;;  %5846 = vmatpush3.msra.mxu1 %v6292_v47 }
 0x678   :  { %5816 = vmatprep.subr.mxu0 %v6042_v0  ;;  %5847 = vmatprep.subr.mxu1 %v6042_v0 }
 0x679   :  { %5817 = vmatpush3.msra.mxu0 %v6188_v52  ;;  %5848 = vmatpush3.msra.mxu1 %v6301_v56 }
 0x67a   :  { %5819 = vmatmul.mubr.f32.vlgmr.msra.gmra.mxu0 %v3572_v21  ;;  %5849 = vmatprep.subr.mxu1 %v6042_v0 }
 0x67b   :  { %5850 = vmatpush3.msra.mxu1 %v6307_v58  ;;  %5832 = vmatprep.subr.mxu0 %v6042_v0 }
 0x67c   :  { %5851 = vmatprep.mubr.msk.f32.mxu1 %vm6043_vm0, %v6042_v0  ;;  %5865 = vmatprep.subr.mxu1 %v6042_v0 }
 0x67d   :  { %5833 = vmatpush3.msra.mxu0 %v6248_v20  ;;  %5840 = vmatprep.mubr.msk.f32.mxu0 %vm6043_vm0, %v6042_v0 }
 0x67e   :  { %5834 = vmatprep.subr.mxu0 %v6042_v0 }
 0x67f   :  { %5835 = vmatpush3.msra.mxu0 %v6253_v23 }
 0x680   :  { %5836 = vmatprep.subr.mxu0 %v6042_v0 }
 0x681   :  { %5837 = vmatpush3.msra.mxu0 %v6263_v27 }
 0x682   :  { %5838 = vmatprep.subr.mxu0 %v6042_v0 }
 0x683   :  { %5839 = vmatpush3.msra.mxu0 %v6275_v32 }
 0x684   :  { %5854 = vmatprep.subr.mxu0 %v6042_v0 }
 0x720   :  { %v3669_v33 = vpop.f32.mrf.mxu1 }
 0x722   :  { %v5787_v35 = vpop.f32.mrf.mxu1 }
 0x728   :  { %v3826_v36 = vpop.f32.mrf.mxu1 }
 0x729   :  { %v3578_v38 = vpop.f32.mrf.mxu0 }
 0x72a   :  { %v5809_v39 = vpop.f32.mrf.mxu1  ;;  %v3579_v44 = vadd.f32 %v5971_v43, %v3578_v38 }
 0x72b   :  { %v5776_v40 = vpop.f32.mrf.mxu0 }
 0x72c   :  { %v3670_v49 = vadd.f32 %v3669_v33, %v3579_v44 }
 0x731   :  { %v3749_v45 = vpop.f32.mrf.mxu0 }
 0x732   :  { %v3984_v48 = vpop.f32.mrf.mxu1  ;;  %v3750_v47 = vadd.f32 %v3749_v45, %v3670_v49 }
 0x733   :  { %v5798_v52 = vpop.f32.mrf.mxu0 }
 0x734   :  { %v5831_v34 = vpop.f32.mrf.mxu1  ;;  %v3827_v56 = vadd.f32 %v3826_v36, %v3750_v47 }
 0x73a   :  { %v3909_v58 = vpop.f32.mrf.mxu0 }
 0x73b   :  { %v3910_v51 = vadd.f32 %v3909_v58, %v3827_v56 }
 0x73c   :  { %v5820_v57 = vpop.f32.mrf.mxu0 }
 0x73d   :  { %v3985_v59 = vadd.f32 %v3984_v48, %v3910_v51 }
 0x73f   :  { %v3988_v60 = vmax.f32 %v3985_v59, 0.0  ;;  %v5003_v59 = vld [vmem:[#allocation5 + $0x98] ss:$0 sm:$0xff] }
 0x741   :  { %v3995_v61 = vsel %vm57_vm1, %v3988_v60, 0 }
 0x742   :  { %v4066_v62 = vand.u32 4294901760, %v3995_v61 }
 0x744   :  { %v4067_v2 = vsub.f32 %v3995_v61, %v4066_v62  ;;  %5852 = vmatmul.mubr.f32.vlgmr.msra.gmra.mxu1 %v4066_v62 }
 0x745   :  { %5866 = vmatpush3.msra.mxu1 %v6248_v20  ;;  %5873 = vmatprep.mubr.msk.f32.mxu1 %vm6043_vm0, %v6042_v0 }
 0x746   :  { %5867 = vmatprep.subr.mxu1 %v6042_v0  ;;  %v4068_v63 = vand.u32 4294901760, %v4067_v2 }
 0x747   :  { %5868 = vmatpush3.msra.mxu1 %v6253_v23 }
 0x748   :  { %5869 = vmatprep.subr.mxu1 %v6042_v0  ;;  %v4069_v1 = vsub.f32 %v4067_v2, %v4068_v63 }
 0x749   :  { %5870 = vmatpush3.msra.mxu1 %v6263_v27 }
 0x74a   :  { %5871 = vmatprep.subr.mxu1 %v6042_v0  ;;  %v4070_v46 = vand.u32 4294901760, %v4069_v1 }
 0x74b   :  { %5872 = vmatpush3.msra.mxu1 %v6275_v32 }
 0x74c   :  { %5874 = vmatmul.mubr.f32.vlgmr.msra.gmra.mxu1 %v4068_v63  ;;  %5887 = vmatprep.subr.mxu1 %v6042_v0 }
 0x74d   :  { %5841 = vmatmul.mubr.f32.vlgmr.msra.gmra.mxu0 %v4070_v46  ;;  %5888 = vmatpush3.msra.mxu1 %v6248_v20  ;;  %v4485_v20 = vld [vmem:[#allocation5 + $0x90] sm:$0xff] }
 0x74e   :  { %5855 = vmatpush3.msra.mxu0 %v6251_v22  ;;  %5889 = vmatprep.subr.mxu1 %v6042_v0  ;;  %v6728_v22 = vand.u32 4294901760, %v4485_v20 }
 0x74f   :  { %5856 = vmatprep.subr.mxu0 %v6042_v0  ;;  %5890 = vmatpush3.msra.mxu1 %v6253_v23  ;;  %v4484_v23 = vld [vmem:[#allocation5 + $0x88] sm:$0xff] }
 0x750   :  { %5857 = vmatpush3.msra.mxu0 %v6261_v26  ;;  %5891 = vmatprep.subr.mxu1 %v6042_v0  ;;  %v6733_v26 = vand.u32 4294901760, %v4484_v23 }
 0x751   :  { %5858 = vmatprep.subr.mxu0 %v6042_v0  ;;  %5892 = vmatpush3.msra.mxu1 %v6263_v27  ;;  %v4483_v27 = vld [vmem:[#allocation5 + $0x80] sm:$0xff] }
 0x752   :  { %5859 = vmatpush3.msra.mxu0 %v6273_v31  ;;  %5893 = vmatprep.subr.mxu1 %v6042_v0  ;;  %v6739_v31 = vsub.f32 %v4484_v23, %v6733_v26 }
 0x753   :  { %5860 = vmatprep.subr.mxu0 %v6042_v0  ;;  %5862 = vmatprep.mubr.msk.f32.mxu0 %vm6043_vm0, %v6042_v0 }
 0x754   :  { %5861 = vmatpush3.msra.mxu0 %v6287_v42  ;;  %5894 = vmatpush3.msra.mxu1 %v6275_v32  ;;  %v6741_v32 = vand.u32 4294901760, %v4483_v27 }
 0x755   :  { %5895 = vmatprep.mubr.msk.f32.mxu1 %vm6043_vm0, %v6042_v0  ;;  %5863 = vmatmul.mubr.f32.vlgmr.msra.gmra.mxu0 %v4067_v2 }
 0x756   :  { %5876 = vmatprep.subr.mxu0 %v6042_v0  ;;  %5896 = vmatmul.mubr.f32.vlgmr.msra.gmra.mxu1 %v4066_v62  ;;  %v6750_v50 = vsub.f32 %v4483_v27, %v6741_v32 }
 0x757   :  { %5877 = vmatpush3.msra.mxu0 %v6258_v25  ;;  %5884 = vmatprep.mubr.msk.f32.mxu0 %vm6043_vm0, %v6042_v0  ;;  %v6731_v25 = vsub.f32 %v4485_v20, %v6728_v22 }
 0x758   :  { %5878 = vmatprep.subr.mxu0 %v6042_v0  ;;  %5909 = vmatprep.subr.mxu1 %v6042_v0  ;;  %v4614_v4 = vand.u32 4294901760, %v6750_v50 }
 0x759   :  { %5879 = vmatpush3.msra.mxu0 %v6270_v30  ;;  %5917 = vmatprep.mubr.msk.f32.mxu1 %vm6043_vm0, %v6042_v0  ;;  %v4600_v30 = vand.u32 4294901760, %v6731_v25 }
 0x75a   :  { %5880 = vmatprep.subr.mxu0 %v6042_v0  ;;  %v4615_v7 = vsub.f32 %v6750_v50, %v4614_v4 }
 0x75b   :  { %5881 = vmatpush3.msra.mxu0 %v6284_v41  ;;  %v4482_v41 = vld [vmem:[#allocation5 + $0x78] sm:$0xff]  ;;  %v4601_v42 = vsub.f32 %v6731_v25, %v4600_v30 }
 0x75c   :  { %5882 = vmatprep.subr.mxu0 %v6042_v0  ;;  %v6752_v53 = vand.u32 4294901760, %v4482_v41  ;;  %v4616_v9 = vand.u32 4294901760, %v4615_v7 }
 0x75d   :  { %5883 = vmatpush3.msra.mxu0 %v6297_v54  ;;  %v4607_v54 = vand.u32 4294901760, %v6739_v31  ;;  %v4602_v55 = vand.u32 4294901760, %v4601_v42 }
 0x75e   :  { %5885 = vmatmul.mubr.f32.vlgmr.msra.gmra.mxu0 %v4066_v62  ;;  %5898 = vmatprep.subr.mxu0 %v6042_v0  ;;  %v6761_v5 = vsub.f32 %v4482_v41, %v6752_v53 }
 0x75f   :  { %5906 = vmatprep.mubr.msk.f32.mxu0 %vm6043_vm0, %v6042_v0  ;;  %5899 = vmatpush3.msra.mxu0 %v6728_v22  ;;  %v4608_v3 = vsub.f32 %v6739_v31, %v4607_v54 }
 0x760   :  { %5900 = vmatprep.subr.mxu0 %v6042_v0  ;;  %5910 = vmatpush3.msra.mxu1 %v4602_v55  ;;  %v4621_v8 = vand.u32 4294901760, %v6761_v5 }
 0x761   :  { %5901 = vmatpush3.msra.mxu0 %v6733_v26  ;;  %v4609_v6 = vand.u32 4294901760, %v4608_v3  ;;  %5911 = vmatprep.subr.mxu1 %v6042_v0 }
 0x762   :  { %5902 = vmatprep.subr.mxu0 %v6042_v0  ;;  %v4622_v10 = vsub.f32 %v6761_v5, %v4621_v8 }
 0x763   :  { %5903 = vmatpush3.msra.mxu0 %v6741_v32  ;;  %5912 = vmatpush3.msra.mxu1 %v4609_v6 }
 0x764   :  { %5904 = vmatprep.subr.mxu0 %v6042_v0  ;;  %5913 = vmatprep.subr.mxu1 %v6042_v0  ;;  %v4623_v11 = vand.u32 4294901760, %v4622_v10 }
 0x765   :  { %5905 = vmatpush3.msra.mxu0 %v6752_v53  ;;  %5914 = vmatpush3.msra.mxu1 %v4616_v9 }
 0x766   :  { %5920 = vmatprep.subr.mxu0 %v6042_v0  ;;  %5915 = vmatprep.subr.mxu1 %v6042_v0 }
 0x767   :  { %5916 = vmatpush3.msra.mxu1 %v4623_v11 }
 0x768   :  { %5931 = vmatprep.subr.mxu1 %v6042_v0 }
 0x804   :  { %v4163_v12 = vpop.f32.mrf.mxu1 }
 0x806   :  { %v5853_v13 = vpop.f32.mrf.mxu1 }
 0x80c   :  { %v4320_v14 = vpop.f32.mrf.mxu1 }
 0x80d   :  { %v4072_v15 = vpop.f32.mrf.mxu0 }
 0x80e   :  { %v5875_v16 = vpop.f32.mrf.mxu1  ;;  %v4073_v19 = vadd.f32 %v5002_v18, %v4072_v15 }
 0x80f   :  { %v5842_v17 = vpop.f32.mrf.mxu0 }
 0x810   :  { %v4164_v28 = vadd.f32 %v4163_v12, %v4073_v19 }
 0x815   :  { %v4243_v21 = vpop.f32.mrf.mxu0 }
 0x816   :  { %v4478_v24 = vpop.f32.mrf.mxu1  ;;  %v4244_v33 = vadd.f32 %v4243_v21, %v4164_v28 }
 0x817   :  { %v5864_v29 = vpop.f32.mrf.mxu0 }
 0x818   :  { %v5897_v37 = vpop.f32.mrf.mxu1  ;;  %v4321_v35 = vadd.f32 %v4320_v14, %v4244_v33 }
 0x81e   :  { %v4403_v36 = vpop.f32.mrf.mxu0 }
 0x81f   :  { %v4404_v38 = vadd.f32 %v4403_v36, %v4321_v35 }
 0x820   :  { %v5886_v39 = vpop.f32.mrf.mxu0 }
 0x821   :  { %v4479_v40 = vadd.f32 %v4478_v24, %v4404_v38 }
 0x823   :  { %v4492_v43 = vsel %vm57_vm1, %v4479_v40, 0 }
 0x824   :  { %v4563_v44 = vand.u32 4294901760, %v4492_v43 }
 0x826   :  { %v4564_v45 = vsub.f32 %v4492_v43, %v4563_v44  ;;  %5918 = vmatmul.mubr.f32.vlgmr.msra.gmra.mxu1 %v4563_v44 }
 0x827   :  { %5932 = vmatpush3.msra.mxu1 %v6728_v22  ;;  %5939 = vmatprep.mubr.msk.f32.mxu1 %vm6043_vm0, %v6042_v0 }
 0x828   :  { %5933 = vmatprep.subr.mxu1 %v6042_v0  ;;  %v4565_v48 = vand.u32 4294901760, %v4564_v45 }
 0x829   :  { %5934 = vmatpush3.msra.mxu1 %v6733_v26 }
 0x82a   :  { %5935 = vmatprep.subr.mxu1 %v6042_v0  ;;  %v4566_v49 = vsub.f32 %v4564_v45, %v4565_v48 }
 0x82b   :  { %5936 = vmatpush3.msra.mxu1 %v6741_v32 }
 0x82c   :  { %5937 = vmatprep.subr.mxu1 %v6042_v0  ;;  %v4567_v52 = vand.u32 4294901760, %v4566_v49 }
 0x82d   :  { %5938 = vmatpush3.msra.mxu1 %v6752_v53 }
 0x82e   :  { %5940 = vmatmul.mubr.f32.vlgmr.msra.gmra.mxu1 %v4565_v48  ;;  %5953 = vmatprep.subr.mxu1 %v6042_v0 }
 0x82f   :  { %5907 = vmatmul.mubr.f32.vlgmr.msra.gmra.mxu0 %v4567_v52  ;;  %5954 = vmatpush3.msra.mxu1 %v6728_v22 }
 0x830   :  { %5921 = vmatpush3.msra.mxu0 %v6731_v25  ;;  %5955 = vmatprep.subr.mxu1 %v6042_v0 }
 0x831   :  { %5922 = vmatprep.subr.mxu0 %v6042_v0  ;;  %5956 = vmatpush3.msra.mxu1 %v6733_v26 }
 0x832   :  { %5923 = vmatpush3.msra.mxu0 %v6739_v31  ;;  %5957 = vmatprep.subr.mxu1 %v6042_v0 }
 0x833   :  { %5924 = vmatprep.subr.mxu0 %v6042_v0  ;;  %5958 = vmatpush3.msra.mxu1 %v6741_v32 }
 0x834   :  { %5925 = vmatpush3.msra.mxu0 %v6750_v50  ;;  %5959 = vmatprep.subr.mxu1 %v6042_v0 }
 0x835   :  { %5926 = vmatprep.subr.mxu0 %v6042_v0  ;;  %5928 = vmatprep.mubr.msk.f32.mxu0 %vm6043_vm0, %v6042_v0 }
 0x836   :  { %5927 = vmatpush3.msra.mxu0 %v6761_v5  ;;  %5960 = vmatpush3.msra.mxu1 %v6752_v53 }
 0x837   :  { %5961 = vmatprep.mubr.msk.f32.mxu1 %vm6043_vm0, %v6042_v0  ;;  %5929 = vmatmul.mubr.f32.vlgmr.msra.gmra.mxu0 %v4564_v45 }
 0x838   :  { %5942 = vmatprep.subr.mxu0 %v6042_v0  ;;  %5962 = vmatmul.mubr.f32.vlgmr.msra.gmra.mxu1 %v4563_v44 }
 0x839   :  { %5943 = vmatpush3.msra.mxu0 %v4600_v30  ;;  %5950 = vmatprep.mubr.msk.f32.mxu0 %vm6043_vm0, %v6042_v0 }
 0x83a   :  { %5944 = vmatprep.subr.mxu0 %v6042_v0 }
 0x83b   :  { %5945 = vmatpush3.msra.mxu0 %v4607_v54 }
 0x83c   :  { %5946 = vmatprep.subr.mxu0 %v6042_v0 }
 0x83d   :  { %5947 = vmatpush3.msra.mxu0 %v4614_v4 }
 0x83e   :  { %5948 = vmatprep.subr.mxu0 %v6042_v0 }
 0x83f   :  { %5949 = vmatpush3.msra.mxu0 %v4621_v8 }
 0x840   :  { %5951 = vmatmul.mubr.f32.vlgmr.msra.gmra.mxu0 %v4563_v44 }
 0x8e6   :  { %v4660_v34 = vpop.f32.mrf.mxu1 }
 0x8e8   :  { %v5919_v47 = vpop.f32.mrf.mxu1 }
 0x8ee   :  { %v4817_v56 = vpop.f32.mrf.mxu1 }
 0x8ef   :  { %v4569_v58 = vpop.f32.mrf.mxu0 }
 0x8f0   :  { %v5941_v51 = vpop.f32.mrf.mxu1  ;;  %v4570_v60 = vadd.f32 %v5003_v59, %v4569_v58 }
 0x8f1   :  { %v5908_v57 = vpop.f32.mrf.mxu0 }
 0x8f2   :  { %v4661_v2 = vadd.f32 %v4660_v34, %v4570_v60 }
 0x8f7   :  { %v4740_v61 = vpop.f32.mrf.mxu0 }
 0x8f8   :  { %v4975_v62 = vpop.f32.mrf.mxu1  ;;  %v4741_v46 = vadd.f32 %v4740_v61, %v4661_v2 }
 0x8f9   :  { %v5930_v63 = vpop.f32.mrf.mxu0 }
 0x8fa   :  { %v5963_v1 = vpop.f32.mrf.mxu1  ;;  %v4818_v20 = vadd.f32 %v4817_v56, %v4741_v46 }
 0x900   :  { %v4900_v0 = vpop.f32.mrf.mxu0 }
 0x901   :  { %v4901_v22 = vadd.f32 %v4900_v0, %v4818_v20 }
 0x902   :  { %v5952_v23 = vpop.f32.mrf.mxu0 }
 0x903   :  { %v4976_v25 = vadd.f32 %v4975_v62, %v4901_v22 }
 0x905   :  { %4980 = vst.msk [vmem:[#allocation7] sm:$0xff] %vm4979_vm2, %v4976_v25 }
 0x906   :  { %6023 = shalt.err (!%p6020_p0)
}
 0x907   :  { %4990 = dma.vmem_to_hbm [thread:$0]  %s4988_s1, 128, %s6824_s2, [#allocation4]  }
 0x908   :  { %6036 = dma.done.wait [#allocation4], 128  }
 0x909   :  { %6037 = vsyncadd [#allocation4], 4294967168 }
 0x90a   :  { %4994 = vsyncpa [#allocation3], 1 }
 0x90b   :  { %4995 = vsyncpa [#allocation6], 1 }
 0x90c   :  { %4996 = vsyncpa [#allocation4], 1 }

</bundles_post_ra>
